<compile_context>
chip_gen: v6e
topology: v6e:2x2x1
jax: 0.10.0
libtpu: 0.0.40
codegen_flags: <defaults>
</compile_context>

<pallas_src>
import functools

import jax
import jax.numpy as jnp
from jax import lax
from jax.experimental import pallas as pl
from jax.experimental.pallas import tpu as pltpu

# ----- synthetic "bert-base-uncased"-style config at small shapes -----
HIDDEN = 32
HEADS = 4
HEAD_DIM = HIDDEN // HEADS
INTER = 64
LAYERS = 2
VOCAB = 100
MAX_POS = 32
TYPE_VOCAB = 2
LN_EPS = 1e-12
HEAD_PAD = 128          # lane-dense padded width of the fused (start|end) span head
VEC_ROWS = 8            # packed per-layer small-vector table: 8 rows x 128 lanes
VEC_W = 128


def _layernorm(h, gamma, beta):
    # f32 LayerNorm (keep VPU/EUP math in f32 for v5e compatibility)
    mean = jnp.mean(h, axis=-1, keepdims=True)
    var = jnp.mean(jnp.square(h - mean), axis=-1, keepdims=True)
    return (h - mean) * lax.rsqrt(var + LN_EPS) * gamma + beta


# ---------------------------- fused encoder kernel ----------------------------

def _encoder_kernel(emb_ref, mask_ref, emb_ln_ref,
                    wqkv_ref, wo_ref, w1_ref, w2_ref, vec_ref, wheads_ref,
                    out_ref, x_scr, *, B, S):
    l = pl.program_id(0)
    last = pl.num_programs(0) - 1

    # Layer 0: embedding LayerNorm; result stays resident in VMEM for all layers.
    @pl.when(l == 0)
    def _():
        x_scr[...] = _layernorm(emb_ref[...], emb_ln_ref[0:1, :], emb_ln_ref[1:2, :])

    x = x_scr[...]                                   # (B*S, H) f32, VMEM-resident

    # Packed per-layer small vectors: one (8, 128) table, row/prefix slices only.
    vecs = vec_ref[0]
    bqkv  = vecs[0:1, :3 * HIDDEN]
    bo    = vecs[1:2, :HIDDEN]
    ln1_g = vecs[2:3, :HIDDEN]
    ln1_b = vecs[3:4, :HIDDEN]
    b1    = vecs[4:5, :INTER]
    b2    = vecs[5:6, :HIDDEN]
    ln2_g = vecs[6:7, :HIDDEN]
    ln2_b = vecs[7:8, :HIDDEN]

    wqkv = wqkv_ref[0]                               # (H, 3H)  bf16
    wo = wo_ref[0]                                   # (H, H)   bf16
    w1 = w1_ref[0]                                   # (H, I)   bf16
    w2 = w2_ref[0]                                   # (I, H)   bf16

    # ---- self attention: fused QKV projection (scale pre-folded into q cols) ----
    qkv = jnp.dot(x.astype(jnp.bfloat16), wqkv,
                  preferred_element_type=jnp.float32) + bqkv        # (B*S, 3H) f32
    q = qkv[:, :HIDDEN]
    k = qkv[:, HIDDEN:2 * HIDDEN]
    v = qkv[:, 2 * HIDDEN:]

    # Hoisted mask broadcast: (B, 1, S) -> (B, S, S), emitted once per layer.
    mask_full = jnp.broadcast_to(mask_ref[...], (B, S, S))

    attn_acc = None
    for h in range(HEADS):                           # static unroll over tiny heads
        sl = slice(h * HEAD_DIM, (h + 1) * HEAD_DIM)
        # (B*S, D) -> (B, S, D): leading-dim split only (sublane 16 -> 8), no relayout.
        qh = q[:, sl].reshape(B, S, HEAD_DIM).astype(jnp.bfloat16)
        kh = k[:, sl].reshape(B, S, HEAD_DIM).astype(jnp.bfloat16)
        vh = v[:, sl].reshape(B, S, HEAD_DIM).astype(jnp.bfloat16)
        # batched over batch dim; no explicit transpose needed
        scores = jnp.einsum('bqd,bkd->bqk', qh, kh,
                            preferred_element_type=jnp.float32) + mask_full
        m = jnp.max(scores, axis=-1, keepdims=True)
        p = jnp.exp(scores - m)
        denom = jnp.sum(p, axis=-1, keepdims=True)
        probs = p * pl.reciprocal(denom, approx=True)   # EUP reciprocal, not VALU divide
        ctx = jnp.einsum('bqk,bkd->bqd', probs.astype(jnp.bfloat16), vh,
                         preferred_element_type=jnp.float32)        # (B, S, D)
        # Fold head context straight into the output projection (no lane concat):
        part = jnp.dot(ctx.reshape(B * S, HEAD_DIM).astype(jnp.bfloat16),
                       wo[sl, :], preferred_element_type=jnp.float32)
        attn_acc = part if attn_acc is None else attn_acc + part
    attn_out = attn_acc + bo
    x = _layernorm(attn_out + x, ln1_g, ln1_b)

    # ---- feed forward ----
    inter = jnp.dot(x.astype(jnp.bfloat16), w1,
                    preferred_element_type=jnp.float32) + b1
    # TODO(synk): HF BERT uses exact erf-GELU; tanh approximation used for guaranteed Mosaic lowering.
    inter = jax.nn.gelu(inter, approximate=True)
    ffn = jnp.dot(inter.astype(jnp.bfloat16), w2,
                  preferred_element_type=jnp.float32) + b2
    x = _layernorm(ffn + x, ln2_g, ln2_b)
    x_scr[...] = x

    # Last layer: fused (start|end) span head, one lane-dense (B*S, 128) bf16 store.
    @pl.when(l == last)
    def _():
        out_ref[...] = jnp.dot(x.astype(jnp.bfloat16), wheads_ref[...],
                               preferred_element_type=jnp.float32).astype(out_ref.dtype)


# ---------------------------- parameters ----------------------------

def init_params(key):
    def norm(k, shape):
        return 0.02 * jax.random.normal(k, shape, jnp.float32)

    keys = iter(jax.random.split(key, 8 * LAYERS * 16 + 16))
    p = {
        "word_emb": norm(next(keys), (VOCAB, HIDDEN)),
        "pos_emb": norm(next(keys), (MAX_POS, HIDDEN)),
        "type_emb": norm(next(keys), (TYPE_VOCAB, HIDDEN)),
        "emb_ln_g": jnp.ones((HIDDEN,), jnp.float32),
        "emb_ln_b": jnp.zeros((HIDDEN,), jnp.float32),
        "layers": [],
        "w_start": norm(next(keys), (HIDDEN, 1)),   # Linear(hidden, 1, bias=False)
        "w_end": norm(next(keys), (HIDDEN, 1)),     # Linear(hidden, 1, bias=False)
    }
    for _ in range(LAYERS):
        lp = {
            "wq": norm(next(keys), (HIDDEN, HIDDEN)), "bq": jnp.zeros((HIDDEN,), jnp.float32),
            "wk": norm(next(keys), (HIDDEN, HIDDEN)), "bk": jnp.zeros((HIDDEN,), jnp.float32),
            "wv": norm(next(keys), (HIDDEN, HIDDEN)), "bv": jnp.zeros((HIDDEN,), jnp.float32),
            "wo": norm(next(keys), (HIDDEN, HIDDEN)), "bo": jnp.zeros((HIDDEN,), jnp.float32),
            "ln1_g": jnp.ones((HIDDEN,), jnp.float32), "ln1_b": jnp.zeros((HIDDEN,), jnp.float32),
            "w1": norm(next(keys), (HIDDEN, INTER)), "b1": jnp.zeros((INTER,), jnp.float32),
            "w2": norm(next(keys), (INTER, HIDDEN)), "b2": jnp.zeros((HIDDEN,), jnp.float32),
            "ln2_g": jnp.ones((HIDDEN,), jnp.float32), "ln2_b": jnp.zeros((HIDDEN,), jnp.float32),
        }
        p["layers"].append(lp)
    return p


def pack_params(p):
    """Stack per-layer params, fuse QKV & span heads, fold softmax scale, bf16 weights,
    and coalesce the eight small per-layer vectors into one (L, 8, 128) table."""
    scale = 1.0 / float(HEAD_DIM) ** 0.5

    def stack_w(name):
        return jnp.stack([lp[name] for lp in p["layers"]]).astype(jnp.bfloat16)

    # 1/sqrt(head_dim) folded into the q columns of the fused QKV weight & bias.
    wqkv = jnp.stack([jnp.concatenate([lp["wq"] * scale, lp["wk"], lp["wv"]], axis=1)
                      for lp in p["layers"]]).astype(jnp.bfloat16)                 # (L, H, 3H)

    def layer_vecs(lp):
        rows = jnp.zeros((VEC_ROWS, VEC_W), jnp.float32)
        rows = rows.at[0, :3 * HIDDEN].set(
            jnp.concatenate([lp["bq"] * scale, lp["bk"], lp["bv"]]))
        rows = rows.at[1, :HIDDEN].set(lp["bo"])
        rows = rows.at[2, :HIDDEN].set(lp["ln1_g"])
        rows = rows.at[3, :HIDDEN].set(lp["ln1_b"])
        rows = rows.at[4, :INTER].set(lp["b1"])
        rows = rows.at[5, :HIDDEN].set(lp["b2"])
        rows = rows.at[6, :HIDDEN].set(lp["ln2_g"])
        rows = rows.at[7, :HIDDEN].set(lp["ln2_b"])
        return rows

    vecs = jnp.stack([layer_vecs(lp) for lp in p["layers"]])                      # (L, 8, 128)

    # Fused span heads, zero-padded to 128 lanes (lanes >=2 are intentionally zero).
    w_heads = jnp.concatenate([p["w_start"], p["w_end"]], axis=1)                  # (H, 2)
    w_heads = jnp.pad(w_heads, ((0, 0), (0, HEAD_PAD - 2))).astype(jnp.bfloat16)   # (H, 128)

    emb_ln = jnp.stack([p["emb_ln_g"], p["emb_ln_b"]]).astype(jnp.float32)         # (2, H)

    return {
        "word_emb": p["word_emb"], "pos_emb": p["pos_emb"], "type_emb": p["type_emb"],
        "emb_ln": emb_ln,
        "wqkv": wqkv,
        "wo": stack_w("wo"), "w1": stack_w("w1"), "w2": stack_w("w2"),
        "vecs": vecs,
        "w_heads": w_heads,
    }


# ---------------------------- forward ----------------------------

def qabert_forward(packed, input_ids, token_type_ids, attention_mask):
    B, S = input_ids.shape
    pos_ids = jnp.arange(S)

    # BERT embeddings (dropout is identity at inference); gathers are plain-JAX glue.
    emb = (packed["word_emb"][input_ids]
           + packed["pos_emb"][pos_ids][None, :, :]
           + packed["type_emb"][token_type_ids]).astype(jnp.float32)        # (B, S, H)
    emb2d = emb.reshape(B * S, HIDDEN)                                      # batch folded into rows

    # Extended additive attention mask, one copy per batch (broadcast over heads in-kernel).
    add_mask = ((1.0 - attention_mask.astype(jnp.float32)) * -10000.0).reshape(B, 1, S)

    H3 = 3 * HIDDEN

    # Advisory cost estimate for XLA's scheduler.
    flops_layer = (2 * B * S * HIDDEN * H3
                   + HEADS * 2 * (2 * B * S * S * HEAD_DIM)
                   + 2 * B * S * HIDDEN * HIDDEN
                   + 2 * B * S * HIDDEN * INTER
                   + 2 * B * S * INTER * HIDDEN)
    flops = LAYERS * flops_layer + 2 * B * S * HIDDEN * HEAD_PAD
    transcendentals = LAYERS * (B * HEADS * S * S + B * S * INTER + 4 * B * S)
    bytes_accessed = (emb2d.size * 4 + add_mask.size * 4 + packed["emb_ln"].size * 4
                      + packed["wqkv"].size * 2 + packed["wo"].size * 2
                      + packed["w1"].size * 2 + packed["w2"].size * 2
                      + packed["vecs"].size * 4 + packed["w_heads"].size * 2
                      + B * S * HEAD_PAD * 2)

    out = pl.pallas_call(
        functools.partial(_encoder_kernel, B=B, S=S),
        grid_spec=pltpu.PrefetchScalarGridSpec(
            num_scalar_prefetch=0,
            grid=(LAYERS,),                                  # layers only; batch is in the block
            in_specs=[
                pl.BlockSpec((B * S, HIDDEN), lambda l: (0, 0)),             # emb (flattened batch)
                pl.BlockSpec((B, 1, S), lambda l: (0, 0, 0)),                # additive mask
                pl.BlockSpec((2, HIDDEN), lambda l: (0, 0)),                 # emb LN gamma/beta
                pl.BlockSpec((1, HIDDEN, H3), lambda l: (l, 0, 0)),          # wqkv
                pl.BlockSpec((1, HIDDEN, HIDDEN), lambda l: (l, 0, 0)),      # wo
                pl.BlockSpec((1, HIDDEN, INTER), lambda l: (l, 0, 0)),       # w1
                pl.BlockSpec((1, INTER, HIDDEN), lambda l: (l, 0, 0)),       # w2
                pl.BlockSpec((1, VEC_ROWS, VEC_W), lambda l: (l, 0, 0)),     # packed per-layer vectors
                pl.BlockSpec((HIDDEN, HEAD_PAD), lambda l: (0, 0)),          # fused span heads
            ],
            out_specs=pl.BlockSpec((B * S, HEAD_PAD), lambda l: (0, 0)),
            scratch_shapes=[pltpu.VMEM((B * S, HIDDEN), jnp.float32)],       # resident hidden state
        ),
        out_shape=jax.ShapeDtypeStruct((B * S, HEAD_PAD), jnp.bfloat16),     # bf16 writeback
        compiler_params=pltpu.CompilerParams(dimension_semantics=("arbitrary",)),
        cost_estimate=pl.CostEstimate(flops=flops, transcendentals=transcendentals,
                                      bytes_accessed=bytes_accessed),
    )(emb2d, add_mask, packed["emb_ln"], packed["wqkv"], packed["wo"],
      packed["w1"], packed["w2"], packed["vecs"], packed["w_heads"])

    # Linear(hidden->1, bias=False).squeeze(-1) for both heads (fused into lanes 0 / 1).
    out = out.reshape(B, S, HEAD_PAD)
    start_logits = out[:, :, 0].astype(jnp.float32)
    end_logits = out[:, :, 1].astype(jnp.float32)
    return start_logits, end_logits


if __name__ == "__main__":
    key = jax.random.PRNGKey(0)
    pkey, ikey = jax.random.split(key)
    params = init_params(pkey)
    packed = pack_params(params)

    B, S = 2, 8
    input_ids = jax.random.randint(ikey, (B, S), 0, VOCAB, dtype=jnp.int32)
    token_type_ids = jnp.concatenate(
        [jnp.zeros((B, S // 2), jnp.int32), jnp.ones((B, S // 2), jnp.int32)], axis=1)
    attention_mask = jnp.ones((B, S), jnp.int32)

    fwd = jax.jit(qabert_forward)
    start_logits, end_logits = fwd(packed, input_ids, token_type_ids, attention_mask)
    jax.block_until_ready((start_logits, end_logits))

    assert start_logits.shape == (B, S), start_logits.shape
    assert end_logits.shape == (B, S), end_logits.shape
    assert bool(jnp.all(jnp.isfinite(start_logits))) and bool(jnp.all(jnp.isfinite(end_logits)))
    print("KERNEL_OK")
</pallas_src>

<mosaic_0001>
module attributes {stable_mosaic.version = 11 : i64} {
  func.func @_encoder_kernel(%arg0: i32, %arg1: memref<16x32xf32, #tpu.memory_space<vmem>>, %arg2: memref<2x1x8xf32, #tpu.memory_space<vmem>>, %arg3: memref<2x32xf32, #tpu.memory_space<vmem>>, %arg4: memref<1x32x96xbf16, #tpu.memory_space<vmem>>, %arg5: memref<1x32x32xbf16, #tpu.memory_space<vmem>>, %arg6: memref<1x32x64xbf16, #tpu.memory_space<vmem>>, %arg7: memref<1x64x32xbf16, #tpu.memory_space<vmem>>, %arg8: memref<1x8x128xf32, #tpu.memory_space<vmem>>, %arg9: memref<32x128xbf16, #tpu.memory_space<vmem>>, %arg10: memref<16x128xbf16, #tpu.memory_space<vmem>>, %arg11: memref<16x32xf32, #tpu.memory_space<vmem>>) attributes {dimension_semantics = [#tpu.dimension_semantics<arbitrary>], iteration_bounds = array<i64: 2>, scalar_prefetch = 0 : i64, scratch_operands = 1 : i64, tpu.core_type = #tpu.core_type<tc>, window_params = [{pipeline_mode = #tpu.pipeline_mode<synchronous>, transform_indices = @transform_0, window_bounds = array<i64: 16, 32>}, {pipeline_mode = #tpu.pipeline_mode<synchronous>, transform_indices = @transform_1, window_bounds = array<i64: 2, 1, 8>}, {pipeline_mode = #tpu.pipeline_mode<synchronous>, transform_indices = @transform_2, window_bounds = array<i64: 2, 32>}, {transform_indices = @transform_3, window_bounds = array<i64: 1, 32, 96>}, {transform_indices = @transform_4, window_bounds = array<i64: 1, 32, 32>}, {transform_indices = @transform_5, window_bounds = array<i64: 1, 32, 64>}, {transform_indices = @transform_6, window_bounds = array<i64: 1, 64, 32>}, {transform_indices = @transform_7, window_bounds = array<i64: 1, 8, 128>}, {pipeline_mode = #tpu.pipeline_mode<synchronous>, transform_indices = @transform_8, window_bounds = array<i64: 32, 128>}, {pipeline_mode = #tpu.pipeline_mode<synchronous>, transform_indices = @transform_9, window_bounds = array<i64: 16, 128>}]} {
    %c0_i32 = arith.constant 0 : i32
    %0 = arith.cmpi eq, %arg0, %c0_i32 : i32
    %1 = arith.extui %0 : i1 to i32
    %c0_i32_0 = arith.constant 0 : i32
    %2 = arith.cmpi ne, %1, %c0_i32_0 : i32
    scf.if %2 {
      %c0_59 = arith.constant 0 : index
      %c0_60 = arith.constant 0 : index
      %216 = vector.load %arg1[%c0_59, %c0_60] : memref<16x32xf32, #tpu.memory_space<vmem>>, vector<16x32xf32>
      %c0_61 = arith.constant 0 : index
      %c0_62 = arith.constant 0 : index
      %217 = vector.load %arg3[%c0_61, %c0_62] : memref<2x32xf32, #tpu.memory_space<vmem>>, vector<1x32xf32>
      %c1 = arith.constant 1 : index
      %c0_63 = arith.constant 0 : index
      %218 = vector.load %arg3[%c1, %c0_63] : memref<2x32xf32, #tpu.memory_space<vmem>>, vector<1x32xf32>
      %cst_64 = arith.constant dense<0.000000e+00> : vector<16xf32>
      %219 = vector.multi_reduction <add>, %216, %cst_64 [1] : vector<16x32xf32> to vector<16xf32>
      %220 = vector.shape_cast %219 : vector<16xf32> to vector<16x1xf32>
      %cst_65 = arith.constant 3.200000e+01 : f32
      %221 = vector.broadcast %cst_65 : f32 to vector<16x1xf32>
      %222 = arith.divf %220, %221 : vector<16x1xf32>
      %223 = vector.broadcast %222 : vector<16x1xf32> to vector<16x32xf32>
      %224 = arith.subf %216, %223 : vector<16x32xf32>
      %225 = arith.mulf %224, %224 : vector<16x32xf32>
      %cst_66 = arith.constant dense<0.000000e+00> : vector<16xf32>
      %226 = vector.multi_reduction <add>, %225, %cst_66 [1] : vector<16x32xf32> to vector<16xf32>
      %227 = vector.shape_cast %226 : vector<16xf32> to vector<16x1xf32>
      %cst_67 = arith.constant 3.200000e+01 : f32
      %228 = vector.broadcast %cst_67 : f32 to vector<16x1xf32>
      %229 = arith.divf %227, %228 : vector<16x1xf32>
      %230 = vector.broadcast %222 : vector<16x1xf32> to vector<16x32xf32>
      %231 = arith.subf %216, %230 : vector<16x32xf32>
      %cst_68 = arith.constant 9.99999996E-13 : f32
      %232 = vector.broadcast %cst_68 : f32 to vector<16x1xf32>
      %233 = arith.addf %229, %232 : vector<16x1xf32>
      %234 = math.rsqrt %233 : vector<16x1xf32>
      %235 = vector.broadcast %234 : vector<16x1xf32> to vector<16x32xf32>
      %236 = arith.mulf %231, %235 : vector<16x32xf32>
      %237 = vector.broadcast %217 : vector<1x32xf32> to vector<16x32xf32>
      %238 = arith.mulf %236, %237 : vector<16x32xf32>
      %239 = vector.broadcast %218 : vector<1x32xf32> to vector<16x32xf32>
      %240 = arith.addf %238, %239 : vector<16x32xf32>
      %c0_69 = arith.constant 0 : index
      %c0_70 = arith.constant 0 : index
      %241 = vector.load %arg11[%c0_69, %c0_70] : memref<16x32xf32, #tpu.memory_space<vmem>>, vector<16x32xf32>
      tpu.vector_store %arg11[%c0_69, %c0_70], %240 {strides = array<i32>} : memref<16x32xf32, #tpu.memory_space<vmem>>, vector<16x32xf32>,
    } else {
    }
    %c0 = arith.constant 0 : index
    %c0_1 = arith.constant 0 : index
    %3 = vector.load %arg11[%c0, %c0_1] : memref<16x32xf32, #tpu.memory_space<vmem>>, vector<16x32xf32>
    %c0_2 = arith.constant 0 : index
    %c0_3 = arith.constant 0 : index
    %c0_4 = arith.constant 0 : index
    %4 = vector.load %arg8[%c0_2, %c0_3, %c0_4] : memref<1x8x128xf32, #tpu.memory_space<vmem>>, vector<1x8x128xf32>
    %5 = vector.shape_cast %4 : vector<1x8x128xf32> to vector<8x128xf32>
    %6 = vector.extract_strided_slice %5 {offsets = [0, 0], sizes = [1, 96], strides = [1, 1]} : vector<8x128xf32> to vector<1x96xf32>
    %7 = vector.extract_strided_slice %5 {offsets = [1, 0], sizes = [1, 32], strides = [1, 1]} : vector<8x128xf32> to vector<1x32xf32>
    %8 = vector.extract_strided_slice %5 {offsets = [2, 0], sizes = [1, 32], strides = [1, 1]} : vector<8x128xf32> to vector<1x32xf32>
    %9 = vector.extract_strided_slice %5 {offsets = [3, 0], sizes = [1, 32], strides = [1, 1]} : vector<8x128xf32> to vector<1x32xf32>
    %10 = vector.extract_strided_slice %5 {offsets = [4, 0], sizes = [1, 64], strides = [1, 1]} : vector<8x128xf32> to vector<1x64xf32>
    %11 = vector.extract_strided_slice %5 {offsets = [5, 0], sizes = [1, 32], strides = [1, 1]} : vector<8x128xf32> to vector<1x32xf32>
    %12 = vector.extract_strided_slice %5 {offsets = [6, 0], sizes = [1, 32], strides = [1, 1]} : vector<8x128xf32> to vector<1x32xf32>
    %13 = vector.extract_strided_slice %5 {offsets = [7, 0], sizes = [1, 32], strides = [1, 1]} : vector<8x128xf32> to vector<1x32xf32>
    %c0_5 = arith.constant 0 : index
    %c0_6 = arith.constant 0 : index
    %c0_7 = arith.constant 0 : index
    %14 = vector.load %arg4[%c0_5, %c0_6, %c0_7] : memref<1x32x96xbf16, #tpu.memory_space<vmem>>, vector<1x32x96xbf16>
    %15 = vector.shape_cast %14 : vector<1x32x96xbf16> to vector<32x96xbf16>
    %c0_8 = arith.constant 0 : index
    %c0_9 = arith.constant 0 : index
    %c0_10 = arith.constant 0 : index
    %16 = vector.load %arg5[%c0_8, %c0_9, %c0_10] : memref<1x32x32xbf16, #tpu.memory_space<vmem>>, vector<1x32x32xbf16>
    %17 = vector.shape_cast %16 : vector<1x32x32xbf16> to vector<32x32xbf16>
    %c0_11 = arith.constant 0 : index
    %c0_12 = arith.constant 0 : index
    %c0_13 = arith.constant 0 : index
    %18 = vector.load %arg6[%c0_11, %c0_12, %c0_13] : memref<1x32x64xbf16, #tpu.memory_space<vmem>>, vector<1x32x64xbf16>
    %19 = vector.shape_cast %18 : vector<1x32x64xbf16> to vector<32x64xbf16>
    %c0_14 = arith.constant 0 : index
    %c0_15 = arith.constant 0 : index
    %c0_16 = arith.constant 0 : index
    %20 = vector.load %arg7[%c0_14, %c0_15, %c0_16] : memref<1x64x32xbf16, #tpu.memory_space<vmem>>, vector<1x64x32xbf16>
    %21 = vector.shape_cast %20 : vector<1x64x32xbf16> to vector<64x32xbf16>
    %22 = arith.truncf %3 : vector<16x32xf32> to vector<16x32xbf16>
    %cst = arith.constant dense<0.000000e+00> : vector<16x96xf32>
    %23 = tpu.matmul %22, %15, %cst {dimension_numbers = #tpu.dot_dimension_numbers<[1], [0], [0], [1], [0, 0, 1, 1], [], []>} : vector<16x32xbf16>, vector<32x96xbf16>, vector<16x96xf32> -> vector<16x96xf32>
    %24 = vector.broadcast %6 : vector<1x96xf32> to vector<16x96xf32>
    %25 = arith.addf %23, %24 : vector<16x96xf32>
    %26 = vector.extract_strided_slice %25 {offsets = [0, 0], sizes = [16, 32], strides = [1, 1]} : vector<16x96xf32> to vector<16x32xf32>
    %27 = vector.extract_strided_slice %25 {offsets = [0, 32], sizes = [16, 32], strides = [1, 1]} : vector<16x96xf32> to vector<16x32xf32>
    %28 = vector.extract_strided_slice %25 {offsets = [0, 64], sizes = [16, 32], strides = [1, 1]} : vector<16x96xf32> to vector<16x32xf32>
    %c0_17 = arith.constant 0 : index
    %c0_18 = arith.constant 0 : index
    %c0_19 = arith.constant 0 : index
    %29 = vector.load %arg2[%c0_17, %c0_18, %c0_19] : memref<2x1x8xf32, #tpu.memory_space<vmem>>, vector<2x1x8xf32>
    %30 = vector.shape_cast %29 : vector<2x1x8xf32> to vector<2x1x8xf32>
    %31 = vector.broadcast %30 : vector<2x1x8xf32> to vector<2x8x8xf32>
    %32 = vector.extract_strided_slice %26 {offsets = [0, 0], sizes = [16, 8], strides = [1, 1]} : vector<16x32xf32> to vector<16x8xf32>
    %33 = vector.shape_cast %32 : vector<16x8xf32> to vector<2x8x8xf32>
    %34 = arith.truncf %33 : vector<2x8x8xf32> to vector<2x8x8xbf16>
    %35 = vector.extract_strided_slice %27 {offsets = [0, 0], sizes = [16, 8], strides = [1, 1]} : vector<16x32xf32> to vector<16x8xf32>
    %36 = vector.shape_cast %35 : vector<16x8xf32> to vector<2x8x8xf32>
    %37 = arith.truncf %36 : vector<2x8x8xf32> to vector<2x8x8xbf16>
    %38 = vector.extract_strided_slice %28 {offsets = [0, 0], sizes = [16, 8], strides = [1, 1]} : vector<16x32xf32> to vector<16x8xf32>
    %39 = vector.shape_cast %38 : vector<16x8xf32> to vector<2x8x8xf32>
    %40 = arith.truncf %39 : vector<2x8x8xf32> to vector<2x8x8xbf16>
    "tpu.trace_start"() <{level = 10 : i32, message = "bqd,bkd->bqk"}> : () -> ()
    %cst_20 = arith.constant dense<0.000000e+00> : vector<2x8x8xf32>
    %41 = tpu.matmul %34, %37, %cst_20 {dimension_numbers = #tpu.dot_dimension_numbers<[2], [2], [1], [1], [0, 0, 0, 1, 1, 1], [0], [0]>} : vector<2x8x8xbf16>, vector<2x8x8xbf16>, vector<2x8x8xf32> -> vector<2x8x8xf32>
    "tpu.trace_stop"() : () -> ()
    %42 = arith.addf %41, %31 : vector<2x8x8xf32>
    %cst_21 = arith.constant dense<0xFF800000> : vector<2x8xf32>
    %43 = vector.multi_reduction <maximumf>, %42, %cst_21 [2] : vector<2x8x8xf32> to vector<2x8xf32>
    %44 = vector.shape_cast %43 : vector<2x8xf32> to vector<2x8x1xf32>
    %45 = vector.broadcast %44 : vector<2x8x1xf32> to vector<2x8x8xf32>
    %46 = arith.subf %42, %45 : vector<2x8x8xf32>
    %47 = math.exp %46 : vector<2x8x8xf32>
    %cst_22 = arith.constant dense<0.000000e+00> : vector<2x8xf32>
    %48 = vector.multi_reduction <add>, %47, %cst_22 [2] : vector<2x8x8xf32> to vector<2x8xf32>
    %49 = vector.shape_cast %48 : vector<2x8xf32> to vector<2x8x1xf32>
    %50 = tpu.reciprocal %49 {approx = true} : vector<2x8x1xf32> -> vector<2x8x1xf32>
    %51 = vector.broadcast %50 : vector<2x8x1xf32> to vector<2x8x8xf32>
    %52 = arith.mulf %47, %51 : vector<2x8x8xf32>
    %53 = arith.truncf %52 : vector<2x8x8xf32> to vector<2x8x8xbf16>
    "tpu.trace_start"() <{level = 10 : i32, message = "bqk,bkd->bqd"}> : () -> ()
    %cst_23 = arith.constant dense<0.000000e+00> : vector<2x8x8xf32>
    %54 = tpu.matmul %53, %40, %cst_23 {dimension_numbers = #tpu.dot_dimension_numbers<[2], [1], [1], [2], [0, 0, 0, 1, 1, 2], [0], [0]>} : vector<2x8x8xbf16>, vector<2x8x8xbf16>, vector<2x8x8xf32> -> vector<2x8x8xf32>
    "tpu.trace_stop"() : () -> ()
    %55 = vector.shape_cast %54 : vector<2x8x8xf32> to vector<16x8xf32>
    %56 = arith.truncf %55 : vector<16x8xf32> to vector<16x8xbf16>
    %57 = vector.extract_strided_slice %17 {offsets = [0, 0], sizes = [8, 32], strides = [1, 1]} : vector<32x32xbf16> to vector<8x32xbf16>
    %cst_24 = arith.constant dense<0.000000e+00> : vector<16x32xf32>
    %58 = tpu.matmul %56, %57, %cst_24 {dimension_numbers = #tpu.dot_dimension_numbers<[1], [0], [0], [1], [0, 0, 1, 1], [], []>} : vector<16x8xbf16>, vector<8x32xbf16>, vector<16x32xf32> -> vector<16x32xf32>
    %59 = vector.extract_strided_slice %26 {offsets = [0, 8], sizes = [16, 8], strides = [1, 1]} : vector<16x32xf32> to vector<16x8xf32>
    %60 = vector.shape_cast %59 : vector<16x8xf32> to vector<2x8x8xf32>
    %61 = arith.truncf %60 : vector<2x8x8xf32> to vector<2x8x8xbf16>
    %62 = vector.extract_strided_slice %27 {offsets = [0, 8], sizes = [16, 8], strides = [1, 1]} : vector<16x32xf32> to vector<16x8xf32>
    %63 = vector.shape_cast %62 : vector<16x8xf32> to vector<2x8x8xf32>
    %64 = arith.truncf %63 : vector<2x8x8xf32> to vector<2x8x8xbf16>
    %65 = vector.extract_strided_slice %28 {offsets = [0, 8], sizes = [16, 8], strides = [1, 1]} : vector<16x32xf32> to vector<16x8xf32>
    %66 = vector.shape_cast %65 : vector<16x8xf32> to vector<2x8x8xf32>
    %67 = arith.truncf %66 : vector<2x8x8xf32> to vector<2x8x8xbf16>
    "tpu.trace_start"() <{level = 10 : i32, message = "bqd,bkd->bqk"}> : () -> ()
    %cst_25 = arith.constant dense<0.000000e+00> : vector<2x8x8xf32>
    %68 = tpu.matmul %61, %64, %cst_25 {dimension_numbers = #tpu.dot_dimension_numbers<[2], [2], [1], [1], [0, 0, 0, 1, 1, 1], [0], [0]>} : vector<2x8x8xbf16>, vector<2x8x8xbf16>, vector<2x8x8xf32> -> vector<2x8x8xf32>
    "tpu.trace_stop"() : () -> ()
    %69 = arith.addf %68, %31 : vector<2x8x8xf32>
    %cst_26 = arith.constant dense<0xFF800000> : vector<2x8xf32>
    %70 = vector.multi_reduction <maximumf>, %69, %cst_26 [2] : vector<2x8x8xf32> to vector<2x8xf32>
    %71 = vector.shape_cast %70 : vector<2x8xf32> to vector<2x8x1xf32>
    %72 = vector.broadcast %71 : vector<2x8x1xf32> to vector<2x8x8xf32>
    %73 = arith.subf %69, %72 : vector<2x8x8xf32>
    %74 = math.exp %73 : vector<2x8x8xf32>
    %cst_27 = arith.constant dense<0.000000e+00> : vector<2x8xf32>
    %75 = vector.multi_reduction <add>, %74, %cst_27 [2] : vector<2x8x8xf32> to vector<2x8xf32>
    %76 = vector.shape_cast %75 : vector<2x8xf32> to vector<2x8x1xf32>
    %77 = tpu.reciprocal %76 {approx = true} : vector<2x8x1xf32> -> vector<2x8x1xf32>
    %78 = vector.broadcast %77 : vector<2x8x1xf32> to vector<2x8x8xf32>
    %79 = arith.mulf %74, %78 : vector<2x8x8xf32>
    %80 = arith.truncf %79 : vector<2x8x8xf32> to vector<2x8x8xbf16>
    "tpu.trace_start"() <{level = 10 : i32, message = "bqk,bkd->bqd"}> : () -> ()
    %cst_28 = arith.constant dense<0.000000e+00> : vector<2x8x8xf32>
    %81 = tpu.matmul %80, %67, %cst_28 {dimension_numbers = #tpu.dot_dimension_numbers<[2], [1], [1], [2], [0, 0, 0, 1, 1, 2], [0], [0]>} : vector<2x8x8xbf16>, vector<2x8x8xbf16>, vector<2x8x8xf32> -> vector<2x8x8xf32>
    "tpu.trace_stop"() : () -> ()
    %82 = vector.shape_cast %81 : vector<2x8x8xf32> to vector<16x8xf32>
    %83 = arith.truncf %82 : vector<16x8xf32> to vector<16x8xbf16>
    %84 = vector.extract_strided_slice %17 {offsets = [8, 0], sizes = [8, 32], strides = [1, 1]} : vector<32x32xbf16> to vector<8x32xbf16>
    %cst_29 = arith.constant dense<0.000000e+00> : vector<16x32xf32>
    %85 = tpu.matmul %83, %84, %cst_29 {dimension_numbers = #tpu.dot_dimension_numbers<[1], [0], [0], [1], [0, 0, 1, 1], [], []>} : vector<16x8xbf16>, vector<8x32xbf16>, vector<16x32xf32> -> vector<16x32xf32>
    %86 = arith.addf %58, %85 : vector<16x32xf32>
    %87 = vector.extract_strided_slice %26 {offsets = [0, 16], sizes = [16, 8], strides = [1, 1]} : vector<16x32xf32> to vector<16x8xf32>
    %88 = vector.shape_cast %87 : vector<16x8xf32> to vector<2x8x8xf32>
    %89 = arith.truncf %88 : vector<2x8x8xf32> to vector<2x8x8xbf16>
    %90 = vector.extract_strided_slice %27 {offsets = [0, 16], sizes = [16, 8], strides = [1, 1]} : vector<16x32xf32> to vector<16x8xf32>
    %91 = vector.shape_cast %90 : vector<16x8xf32> to vector<2x8x8xf32>
    %92 = arith.truncf %91 : vector<2x8x8xf32> to vector<2x8x8xbf16>
    %93 = vector.extract_strided_slice %28 {offsets = [0, 16], sizes = [16, 8], strides = [1, 1]} : vector<16x32xf32> to vector<16x8xf32>
    %94 = vector.shape_cast %93 : vector<16x8xf32> to vector<2x8x8xf32>
    %95 = arith.truncf %94 : vector<2x8x8xf32> to vector<2x8x8xbf16>
    "tpu.trace_start"() <{level = 10 : i32, message = "bqd,bkd->bqk"}> : () -> ()
    %cst_30 = arith.constant dense<0.000000e+00> : vector<2x8x8xf32>
    %96 = tpu.matmul %89, %92, %cst_30 {dimension_numbers = #tpu.dot_dimension_numbers<[2], [2], [1], [1], [0, 0, 0, 1, 1, 1], [0], [0]>} : vector<2x8x8xbf16>, vector<2x8x8xbf16>, vector<2x8x8xf32> -> vector<2x8x8xf32>
    "tpu.trace_stop"() : () -> ()
    %97 = arith.addf %96, %31 : vector<2x8x8xf32>
    %cst_31 = arith.constant dense<0xFF800000> : vector<2x8xf32>
    %98 = vector.multi_reduction <maximumf>, %97, %cst_31 [2] : vector<2x8x8xf32> to vector<2x8xf32>
    %99 = vector.shape_cast %98 : vector<2x8xf32> to vector<2x8x1xf32>
    %100 = vector.broadcast %99 : vector<2x8x1xf32> to vector<2x8x8xf32>
    %101 = arith.subf %97, %100 : vector<2x8x8xf32>
    %102 = math.exp %101 : vector<2x8x8xf32>
    %cst_32 = arith.constant dense<0.000000e+00> : vector<2x8xf32>
    %103 = vector.multi_reduction <add>, %102, %cst_32 [2] : vector<2x8x8xf32> to vector<2x8xf32>
    %104 = vector.shape_cast %103 : vector<2x8xf32> to vector<2x8x1xf32>
    %105 = tpu.reciprocal %104 {approx = true} : vector<2x8x1xf32> -> vector<2x8x1xf32>
    %106 = vector.broadcast %105 : vector<2x8x1xf32> to vector<2x8x8xf32>
    %107 = arith.mulf %102, %106 : vector<2x8x8xf32>
    %108 = arith.truncf %107 : vector<2x8x8xf32> to vector<2x8x8xbf16>
    "tpu.trace_start"() <{level = 10 : i32, message = "bqk,bkd->bqd"}> : () -> ()
    %cst_33 = arith.constant dense<0.000000e+00> : vector<2x8x8xf32>
    %109 = tpu.matmul %108, %95, %cst_33 {dimension_numbers = #tpu.dot_dimension_numbers<[2], [1], [1], [2], [0, 0, 0, 1, 1, 2], [0], [0]>} : vector<2x8x8xbf16>, vector<2x8x8xbf16>, vector<2x8x8xf32> -> vector<2x8x8xf32>
    "tpu.trace_stop"() : () -> ()
    %110 = vector.shape_cast %109 : vector<2x8x8xf32> to vector<16x8xf32>
    %111 = arith.truncf %110 : vector<16x8xf32> to vector<16x8xbf16>
    %112 = vector.extract_strided_slice %17 {offsets = [16, 0], sizes = [8, 32], strides = [1, 1]} : vector<32x32xbf16> to vector<8x32xbf16>
    %cst_34 = arith.constant dense<0.000000e+00> : vector<16x32xf32>
    %113 = tpu.matmul %111, %112, %cst_34 {dimension_numbers = #tpu.dot_dimension_numbers<[1], [0], [0], [1], [0, 0, 1, 1], [], []>} : vector<16x8xbf16>, vector<8x32xbf16>, vector<16x32xf32> -> vector<16x32xf32>
    %114 = arith.addf %86, %113 : vector<16x32xf32>
    %115 = vector.extract_strided_slice %26 {offsets = [0, 24], sizes = [16, 8], strides = [1, 1]} : vector<16x32xf32> to vector<16x8xf32>
    %116 = vector.shape_cast %115 : vector<16x8xf32> to vector<2x8x8xf32>
    %117 = arith.truncf %116 : vector<2x8x8xf32> to vector<2x8x8xbf16>
    %118 = vector.extract_strided_slice %27 {offsets = [0, 24], sizes = [16, 8], strides = [1, 1]} : vector<16x32xf32> to vector<16x8xf32>
    %119 = vector.shape_cast %118 : vector<16x8xf32> to vector<2x8x8xf32>
    %120 = arith.truncf %119 : vector<2x8x8xf32> to vector<2x8x8xbf16>
    %121 = vector.extract_strided_slice %28 {offsets = [0, 24], sizes = [16, 8], strides = [1, 1]} : vector<16x32xf32> to vector<16x8xf32>
    %122 = vector.shape_cast %121 : vector<16x8xf32> to vector<2x8x8xf32>
    %123 = arith.truncf %122 : vector<2x8x8xf32> to vector<2x8x8xbf16>
    "tpu.trace_start"() <{level = 10 : i32, message = "bqd,bkd->bqk"}> : () -> ()
    %cst_35 = arith.constant dense<0.000000e+00> : vector<2x8x8xf32>
    %124 = tpu.matmul %117, %120, %cst_35 {dimension_numbers = #tpu.dot_dimension_numbers<[2], [2], [1], [1], [0, 0, 0, 1, 1, 1], [0], [0]>} : vector<2x8x8xbf16>, vector<2x8x8xbf16>, vector<2x8x8xf32> -> vector<2x8x8xf32>
    "tpu.trace_stop"() : () -> ()
    %125 = arith.addf %124, %31 : vector<2x8x8xf32>
    %cst_36 = arith.constant dense<0xFF800000> : vector<2x8xf32>
    %126 = vector.multi_reduction <maximumf>, %125, %cst_36 [2] : vector<2x8x8xf32> to vector<2x8xf32>
    %127 = vector.shape_cast %126 : vector<2x8xf32> to vector<2x8x1xf32>
    %128 = vector.broadcast %127 : vector<2x8x1xf32> to vector<2x8x8xf32>
    %129 = arith.subf %125, %128 : vector<2x8x8xf32>
    %130 = math.exp %129 : vector<2x8x8xf32>
    %cst_37 = arith.constant dense<0.000000e+00> : vector<2x8xf32>
    %131 = vector.multi_reduction <add>, %130, %cst_37 [2] : vector<2x8x8xf32> to vector<2x8xf32>
    %132 = vector.shape_cast %131 : vector<2x8xf32> to vector<2x8x1xf32>
    %133 = tpu.reciprocal %132 {approx = true} : vector<2x8x1xf32> -> vector<2x8x1xf32>
    %134 = vector.broadcast %133 : vector<2x8x1xf32> to vector<2x8x8xf32>
    %135 = arith.mulf %130, %134 : vector<2x8x8xf32>
    %136 = arith.truncf %135 : vector<2x8x8xf32> to vector<2x8x8xbf16>
    "tpu.trace_start"() <{level = 10 : i32, message = "bqk,bkd->bqd"}> : () -> ()
    %cst_38 = arith.constant dense<0.000000e+00> : vector<2x8x8xf32>
    %137 = tpu.matmul %136, %123, %cst_38 {dimension_numbers = #tpu.dot_dimension_numbers<[2], [1], [1], [2], [0, 0, 0, 1, 1, 2], [0], [0]>} : vector<2x8x8xbf16>, vector<2x8x8xbf16>, vector<2x8x8xf32> -> vector<2x8x8xf32>
    "tpu.trace_stop"() : () -> ()
    %138 = vector.shape_cast %137 : vector<2x8x8xf32> to vector<16x8xf32>
    %139 = arith.truncf %138 : vector<16x8xf32> to vector<16x8xbf16>
    %140 = vector.extract_strided_slice %17 {offsets = [24, 0], sizes = [8, 32], strides = [1, 1]} : vector<32x32xbf16> to vector<8x32xbf16>
    %cst_39 = arith.constant dense<0.000000e+00> : vector<16x32xf32>
    %141 = tpu.matmul %139, %140, %cst_39 {dimension_numbers = #tpu.dot_dimension_numbers<[1], [0], [0], [1], [0, 0, 1, 1], [], []>} : vector<16x8xbf16>, vector<8x32xbf16>, vector<16x32xf32> -> vector<16x32xf32>
    %142 = arith.addf %114, %141 : vector<16x32xf32>
    %143 = vector.broadcast %7 : vector<1x32xf32> to vector<16x32xf32>
    %144 = arith.addf %142, %143 : vector<16x32xf32>
    %145 = arith.addf %144, %3 : vector<16x32xf32>
    %cst_40 = arith.constant dense<0.000000e+00> : vector<16xf32>
    %146 = vector.multi_reduction <add>, %145, %cst_40 [1] : vector<16x32xf32> to vector<16xf32>
    %147 = vector.shape_cast %146 : vector<16xf32> to vector<16x1xf32>
    %cst_41 = arith.constant 3.200000e+01 : f32
    %148 = vector.broadcast %cst_41 : f32 to vector<16x1xf32>
    %149 = arith.divf %147, %148 : vector<16x1xf32>
    %150 = vector.broadcast %149 : vector<16x1xf32> to vector<16x32xf32>
    %151 = arith.subf %145, %150 : vector<16x32xf32>
    %152 = arith.mulf %151, %151 : vector<16x32xf32>
    %cst_42 = arith.constant dense<0.000000e+00> : vector<16xf32>
    %153 = vector.multi_reduction <add>, %152, %cst_42 [1] : vector<16x32xf32> to vector<16xf32>
    %154 = vector.shape_cast %153 : vector<16xf32> to vector<16x1xf32>
    %cst_43 = arith.constant 3.200000e+01 : f32
    %155 = vector.broadcast %cst_43 : f32 to vector<16x1xf32>
    %156 = arith.divf %154, %155 : vector<16x1xf32>
    %157 = vector.broadcast %149 : vector<16x1xf32> to vector<16x32xf32>
    %158 = arith.subf %145, %157 : vector<16x32xf32>
    %cst_44 = arith.constant 9.99999996E-13 : f32
    %159 = vector.broadcast %cst_44 : f32 to vector<16x1xf32>
    %160 = arith.addf %156, %159 : vector<16x1xf32>
    %161 = math.rsqrt %160 : vector<16x1xf32>
    %162 = vector.broadcast %161 : vector<16x1xf32> to vector<16x32xf32>
    %163 = arith.mulf %158, %162 : vector<16x32xf32>
    %164 = vector.broadcast %8 : vector<1x32xf32> to vector<16x32xf32>
    %165 = arith.mulf %163, %164 : vector<16x32xf32>
    %166 = vector.broadcast %9 : vector<1x32xf32> to vector<16x32xf32>
    %167 = arith.addf %165, %166 : vector<16x32xf32>
    %168 = arith.truncf %167 : vector<16x32xf32> to vector<16x32xbf16>
    %cst_45 = arith.constant dense<0.000000e+00> : vector<16x64xf32>
    %169 = tpu.matmul %168, %19, %cst_45 {dimension_numbers = #tpu.dot_dimension_numbers<[1], [0], [0], [1], [0, 0, 1, 1], [], []>} : vector<16x32xbf16>, vector<32x64xbf16>, vector<16x64xf32> -> vector<16x64xf32>
    %170 = vector.broadcast %10 : vector<1x64xf32> to vector<16x64xf32>
    %171 = arith.addf %169, %170 : vector<16x64xf32>
    %172 = arith.mulf %171, %171 : vector<16x64xf32>
    %173 = arith.mulf %171, %172 : vector<16x64xf32>
    %cst_46 = arith.constant 4.471500e-02 : f32
    %174 = vector.broadcast %cst_46 : f32 to vector<16x64xf32>
    %175 = arith.mulf %174, %173 : vector<16x64xf32>
    %176 = arith.addf %171, %175 : vector<16x64xf32>
    %cst_47 = arith.constant 0.797884583 : f32
    %177 = vector.broadcast %cst_47 : f32 to vector<16x64xf32>
    %178 = arith.mulf %177, %176 : vector<16x64xf32>
    %179 = math.tanh %178 : vector<16x64xf32>
    %cst_48 = arith.constant 1.000000e+00 : f32
    %180 = vector.broadcast %cst_48 : f32 to vector<16x64xf32>
    %181 = arith.addf %180, %179 : vector<16x64xf32>
    %cst_49 = arith.constant 5.000000e-01 : f32
    %182 = vector.broadcast %cst_49 : f32 to vector<16x64xf32>
    %183 = arith.mulf %182, %181 : vector<16x64xf32>
    %184 = arith.mulf %171, %183 : vector<16x64xf32>
    %185 = arith.truncf %184 : vector<16x64xf32> to vector<16x64xbf16>
    %cst_50 = arith.constant dense<0.000000e+00> : vector<16x32xf32>
    %186 = tpu.matmul %185, %21, %cst_50 {dimension_numbers = #tpu.dot_dimension_numbers<[1], [0], [0], [1], [0, 0, 1, 1], [], []>} : vector<16x64xbf16>, vector<64x32xbf16>, vector<16x32xf32> -> vector<16x32xf32>
    %187 = vector.broadcast %11 : vector<1x32xf32> to vector<16x32xf32>
    %188 = arith.addf %186, %187 : vector<16x32xf32>
    %189 = arith.addf %188, %167 : vector<16x32xf32>
    %cst_51 = arith.constant dense<0.000000e+00> : vector<16xf32>
    %190 = vector.multi_reduction <add>, %189, %cst_51 [1] : vector<16x32xf32> to vector<16xf32>
    %191 = vector.shape_cast %190 : vector<16xf32> to vector<16x1xf32>
    %cst_52 = arith.constant 3.200000e+01 : f32
    %192 = vector.broadcast %cst_52 : f32 to vector<16x1xf32>
    %193 = arith.divf %191, %192 : vector<16x1xf32>
    %194 = vector.broadcast %193 : vector<16x1xf32> to vector<16x32xf32>
    %195 = arith.subf %189, %194 : vector<16x32xf32>
    %196 = arith.mulf %195, %195 : vector<16x32xf32>
    %cst_53 = arith.constant dense<0.000000e+00> : vector<16xf32>
    %197 = vector.multi_reduction <add>, %196, %cst_53 [1] : vector<16x32xf32> to vector<16xf32>
    %198 = vector.shape_cast %197 : vector<16xf32> to vector<16x1xf32>
    %cst_54 = arith.constant 3.200000e+01 : f32
    %199 = vector.broadcast %cst_54 : f32 to vector<16x1xf32>
    %200 = arith.divf %198, %199 : vector<16x1xf32>
    %201 = vector.broadcast %193 : vector<16x1xf32> to vector<16x32xf32>
    %202 = arith.subf %189, %201 : vector<16x32xf32>
    %cst_55 = arith.constant 9.99999996E-13 : f32
    %203 = vector.broadcast %cst_55 : f32 to vector<16x1xf32>
    %204 = arith.addf %200, %203 : vector<16x1xf32>
    %205 = math.rsqrt %204 : vector<16x1xf32>
    %206 = vector.broadcast %205 : vector<16x1xf32> to vector<16x32xf32>
    %207 = arith.mulf %202, %206 : vector<16x32xf32>
    %208 = vector.broadcast %12 : vector<1x32xf32> to vector<16x32xf32>
    %209 = arith.mulf %207, %208 : vector<16x32xf32>
    %210 = vector.broadcast %13 : vector<1x32xf32> to vector<16x32xf32>
    %211 = arith.addf %209, %210 : vector<16x32xf32>
    %c0_56 = arith.constant 0 : index
    %c0_57 = arith.constant 0 : index
    %212 = vector.load %arg11[%c0_56, %c0_57] : memref<16x32xf32, #tpu.memory_space<vmem>>, vector<16x32xf32>
    tpu.vector_store %arg11[%c0_56, %c0_57], %211 {strides = array<i32>} : memref<16x32xf32, #tpu.memory_space<vmem>>, vector<16x32xf32>,
    %c1_i32 = arith.constant 1 : i32
    %213 = arith.cmpi eq, %arg0, %c1_i32 : i32
    %214 = arith.extui %213 : i1 to i32
    %c0_i32_58 = arith.constant 0 : i32
    %215 = arith.cmpi ne, %214, %c0_i32_58 : i32
    scf.if %215 {
      %216 = arith.truncf %211 : vector<16x32xf32> to vector<16x32xbf16>
      %c0_59 = arith.constant 0 : index
      %c0_60 = arith.constant 0 : index
      %217 = vector.load %arg9[%c0_59, %c0_60] : memref<32x128xbf16, #tpu.memory_space<vmem>>, vector<32x128xbf16>
      %cst_61 = arith.constant dense<0.000000e+00> : vector<16x128xf32>
      %218 = tpu.matmul %216, %217, %cst_61 {dimension_numbers = #tpu.dot_dimension_numbers<[1], [0], [0], [1], [0, 0, 1, 1], [], []>} : vector<16x32xbf16>, vector<32x128xbf16>, vector<16x128xf32> -> vector<16x128xf32>
      %219 = arith.truncf %218 : vector<16x128xf32> to vector<16x128xbf16>
      %c0_62 = arith.constant 0 : index
      %c0_63 = arith.constant 0 : index
      %220 = vector.load %arg10[%c0_62, %c0_63] : memref<16x128xbf16, #tpu.memory_space<vmem>>, vector<16x128xbf16>
      tpu.vector_store %arg10[%c0_62, %c0_63], %219 {strides = array<i32>} : memref<16x128xbf16, #tpu.memory_space<vmem>>, vector<16x128xbf16>,
    } else {
    }
    return
  }
  func.func @transform_0(%arg0: i32) -> (i32, i32) {
    %c0_i32 = arith.constant 0 : i32
    %c0_i32_0 = arith.constant 0 : i32
    %c0_i32_1 = arith.constant 0 : i32
    return %c0_i32, %c0_i32_0 : i32, i32
  }
  func.func @transform_1(%arg0: i32) -> (i32, i32, i32) {
    %c0_i32 = arith.constant 0 : i32
    %c0_i32_0 = arith.constant 0 : i32
    %c0_i32_1 = arith.constant 0 : i32
    %c0_i32_2 = arith.constant 0 : i32
    return %c0_i32, %c0_i32_0, %c0_i32_1 : i32, i32, i32
  }
  func.func @transform_2(%arg0: i32) -> (i32, i32) {
    %c0_i32 = arith.constant 0 : i32
    %c0_i32_0 = arith.constant 0 : i32
    %c0_i32_1 = arith.constant 0 : i32
    return %c0_i32, %c0_i32_0 : i32, i32
  }
  func.func @transform_3(%arg0: i32) -> (i32, i32, i32) {
    %c0_i32 = arith.constant 0 : i32
    %c0_i32_0 = arith.constant 0 : i32
    %c0_i32_1 = arith.constant 0 : i32
    return %arg0, %c0_i32, %c0_i32_0 : i32, i32, i32
  }
  func.func @transform_4(%arg0: i32) -> (i32, i32, i32) {
    %c0_i32 = arith.constant 0 : i32
    %c0_i32_0 = arith.constant 0 : i32
    %c0_i32_1 = arith.constant 0 : i32
    return %arg0, %c0_i32, %c0_i32_0 : i32, i32, i32
  }
  func.func @transform_5(%arg0: i32) -> (i32, i32, i32) {
    %c0_i32 = arith.constant 0 : i32
    %c0_i32_0 = arith.constant 0 : i32
    %c0_i32_1 = arith.constant 0 : i32
    return %arg0, %c0_i32, %c0_i32_0 : i32, i32, i32
  }
  func.func @transform_6(%arg0: i32) -> (i32, i32, i32) {
    %c0_i32 = arith.constant 0 : i32
    %c0_i32_0 = arith.constant 0 : i32
    %c0_i32_1 = arith.constant 0 : i32
    return %arg0, %c0_i32, %c0_i32_0 : i32, i32, i32
  }
  func.func @transform_7(%arg0: i32) -> (i32, i32, i32) {
    %c0_i32 = arith.constant 0 : i32
    %c0_i32_0 = arith.constant 0 : i32
    %c0_i32_1 = arith.constant 0 : i32
    return %arg0, %c0_i32, %c0_i32_0 : i32, i32, i32
  }
  func.func @transform_8(%arg0: i32) -> (i32, i32) {
    %c0_i32 = arith.constant 0 : i32
    %c0_i32_0 = arith.constant 0 : i32
    %c0_i32_1 = arith.constant 0 : i32
    return %c0_i32, %c0_i32_0 : i32, i32
  }
  func.func @transform_9(%arg0: i32) -> (i32, i32) {
    %c0_i32 = arith.constant 0 : i32
    %c0_i32_0 = arith.constant 0 : i32
    %c0_i32_1 = arith.constant 0 : i32
    return %c0_i32, %c0_i32_0 : i32, i32
  }
}

</mosaic_0001>

<bundles_post_ra>
// kernel: qabert_forward.1
= control target key start
LH: loop header
LB: loop body
LE: loop exit
PB: predicated region body
PF: predicated region fallthrough
CT: control target
= control target key end

     0   :  { %s2449_s30 = smov 0   ;;  %s2779_s0 = inlined_call_operand.vmem [shape: f32[16,32], index: 0, kind: input, shape index: {}]   ;;  %s2780_s1 = inlined_call_operand.vmem [shape: f32[2,1,8], index: 1, kind: input, shape index: {}]   ;;  %s2781_s2 = inlined_call_operand.vmem [shape: f32[2,32], index: 2, kind: input, shape index: {}]   ;;  %s2782_s3 = inlined_call_operand.vmem [shape: bf16[2,32,96], index: 3, kind: input, shape index: {}]   ;;  %s2783_s4 = inlined_call_operand.vmem [shape: bf16[2,32,32], index: 4, kind: input, shape index: {}]   ;;  %s2784_s5 = inlined_call_operand.vmem [shape: bf16[2,32,64], index: 5, kind: input, shape index: {}]   ;;  %s2785_s6 = inlined_call_operand.vmem [shape: bf16[2,64,32], index: 6, kind: input, shape index: {}]   ;;  %s2786_s7 = inlined_call_operand.vmem [shape: f32[2,8,128], index: 7, kind: input, shape index: {}]   ;;  %s2787_s8 = inlined_call_operand.vmem [shape: bf16[32,128], index: 8, kind: input, shape index: {}]   ;;  %s2788_s9 = inlined_call_operand.vmem [shape: bf16[16,128], index: 9, kind: output, shape index: {}]  }
   0x1 LB: > { %s2455_s10 = sadd.s32 4294967295, %s2382_s30   ;;  %p2019_p0 = scmp.ge.s32.totalorder %s2382_s30, 1  ;;  %s2382_s30 = sphi %s2449_s30, %s19_s30  }
   0x2   : > { %p321_p1 = scmp.lt.s32.totalorder %s2382_s30, 3 }
   0x4   : > { %p322_p2 = pnand %p2019_p0, %p321_p1 }
   0x5   : > { %p371_p3 = scmp.lt.s32.totalorder (!%p322_p2), %s2455_s10, 1  ;;  %p2029_p4 = scmp.ne.s32.totalorder (!%p322_p2), %s2455_s10, 0 }
   0x6   : > { %325 = sbr.rel (%p322_p2) target bundleno = 4776 (0x12a8), region = 56 }
   0xb   : > { %s372_s11 = scalar_select %p371_p3, %s2455_s10, 1 }
   0xd   : > { %s2073_s12 = sshll.u32 %s372_s11, 4  ;;  %s2076_s13 = sshll.u32 %s372_s11, 5 }
   0xe   : > { %s2464_s16 = scalar_lea.vmem %s2782_s3, %s2073_s12  ;;  %s2469_s19 = scalar_lea.vmem %s2783_s4, %s2073_s12 }
   0xf   : > { %s2474_s22 = scalar_lea.vmem %s2784_s5, %s2073_s12  ;;  %s2479_s25 = scalar_lea.vmem %s2785_s6, %s2076_s13 }
  0x10   : > { %s2028_s26 = sshll.u32 %s372_s11, 3  ;;  %399 = sbr.rel (%p2029_p4) target bundleno = 335 (0x14f), region = 60 }
  0x11   : > { %s2484_s29 = scalar_lea.vmem %s2786_s7, %s2028_s26 }
  0x15   : > { %v400_v0 = vld [vmem:[%s2779_s0] sm:$0xff]  ;;  %vm404_vm0 = vcmask 261120   ;;  %v401_v1 = vld [vmem:[%s2779_s0 + $0x8] sm:$0xff] }
  0x16   : > { %v405_v2 = vsel %vm404_vm0, %v400_v0, 0.0  ;;  %v408_v3 = vsel %vm404_vm0, %v401_v1, 0.0  ;;  %v2030_v21 = vld [vmem:[%s2781_s2] ss:$0 sm:$0xff]  ;;  %v2031_v23 = vld [vmem:[%s2781_s2 + $0x1] ss:$0 sm:$0xff] }
  0x17   : > { %406 = vadd.xlane.f32.xlu0 %v405_v2 }
  0x1b   : > { %409 = vadd.xlane.f32.xlu0 %v408_v3 }
  0xa0   : > { %v407_v4 = vpop.xlane.xlu0 %406 }
  0xa1   : > { %v412_v5 = vmul.f32 0.03125, %v407_v4 }
  0xa3   : > { %v414_v6 = vsub.f32 %v400_v0, %v412_v5 }
  0xa4   : > { %v410_v7 = vpop.xlane.xlu0 %409 }
  0xa5   : > { %v413_v8 = vmul.f32 0.03125, %v410_v7  ;;  %v416_v9 = vmul.f32 %v414_v6, %v414_v6 }
  0xa7   : > { %v415_v10 = vsub.f32 %v401_v1, %v413_v8  ;;  %v418_v11 = vsel %vm404_vm0, %v416_v9, 0.0 }
  0xa8   : > { %419 = vadd.xlane.f32.xlu1 %v418_v11 }
  0xa9   : > { %v417_v12 = vmul.f32 %v415_v10, %v415_v10 }
  0xab   : > { %v421_v13 = vsel %vm404_vm0, %v417_v12, 0.0 }
  0xac   : > { %422 = vadd.xlane.f32.xlu1 %v421_v13 }
 0x131   : > { %v420_v14 = vpop.xlane.xlu1 %419 }
 0x132   : > { %v424_v15 = vmul.f32 0.03125, %v420_v14 }
 0x134   : > { %v426_v16 = vadd.f32 1e-12, %v424_v15 }
 0x135   : > { %v423_v17 = vpop.xlane.xlu1 %422 }
 0x136   : > { %2317 = vrsqrt.f32 %v426_v16  ;;  %v425_v18 = vmul.f32 0.03125, %v423_v17 }
 0x138   : > { %v427_v19 = vadd.f32 1e-12, %v425_v18 }
 0x13a   : > { %2319 = vrsqrt.f32 %v427_v19 }
 0x143   : > { %v2318_v20 = vpop.eup %2317 }
 0x144   : > { %v430_v22 = vmul.f32 %v2318_v20, %v414_v6 }
 0x146   : > { %v436_v24 = vmul.f32 %v2030_v21, %v430_v22 }
 0x147   : > { %v2320_v25 = vpop.eup %2319 }
 0x148   : > { %v442_v26 = vadd.f32 %v2031_v23, %v436_v24  ;;  %v431_v27 = vmul.f32 %v2320_v25, %v415_v10 }
 0x14a   : > { %444 = vst.msk [vmem:[#allocation2] sm:$0xff] %vm404_vm0, %v442_v26  ;;  %v437_v28 = vmul.f32 %v2030_v21, %v431_v27 }
 0x14c   : > { %v443_v29 = vadd.f32 %v2031_v23, %v437_v28 }
 0x14e   : > { %445 = vst.msk [vmem:[#allocation2 + $0x8] sm:$0xff] %vm404_vm0, %v443_v29 }
 0x14f PF: > { %v2321_v30 = vld [vmem:[%s2464_s16 + $0x8] sm:$0xff]   ;;  %v2384_v31 = vmov 0.0   ;;  %v2322_v32 = vld [vmem:[%s2464_s16] sm:$0xff]   ;;  %vm2385_vm1 = vmmov 0   ;;  %vm486_vm2 = vcmask 261120   ;;  %v470_v36 = vlaneseq  ;;  %s2386_s16 = smov 96  }
 0x150   : > { %2138 = vmatprep.subr.bf16.mxu1 %v2384_v31  ;;  %2152 = vmatprep.subr.bf16.mxu0 %v2384_v31  ;;  %v2528_v39 = vld [vmem:[%s2484_s29] sm:$0xff]  ;;  %vm550_vm3 = vcmask 64512   ;;  %s2387_s27 = smov 64   ;;  %s2388_s28 = smov 88   ;;  %vm675_vm4 = vcmask 1043456   ;;  %vm1778_vm5 = vcmask 523264  }
 0x151   : > { %2139 = vmatpush3.bf16.msra.mxu1 %v2321_v30  ;;  %2142 = vmatprep.mubr.msk.bf16.mxu1 %vm2385_vm1, %v2384_v31  ;;  %v2511_v33 = vld [vmem:[#allocation2] sm:$0xff]  ;;  %v2524_v37 = vshrl.u32 %v470_v36, 7  ;;  %s2389_s14 = smov 120   ;;  %s2390_s15 = smov 56  }
 0x152   : > { %2140 = vmatprep.subr.bf16.mxu1 %v2384_v31  ;;  %2154 = vmatprep.mubr.msk.bf16.mxu0 %vm2385_vm1, %v2384_v31  ;;  %v2552_v53 = vld [vmem:[%s2780_s1] ss:$0 sm:$0xff]  ;;  %v2558_v57 = vld [vmem:[%s2780_s1 + $0x1] ss:$0 sm:$0xff]  ;;  %s2391_s12 = smov 112   ;;  %s2392_s17 = smov 80  }
 0x153   : > { %v472_v38 = vsub.s32 0, %v2524_v37  ;;  %s2393_s11 = smov 48   ;;  %s2394_s13 = smov 72  }
 0x154   : > { %s2395_s18 = smov 104   ;;  %s2396_s20 = smov 40  }
 0x155   : > { %v2513_v34 = vld [vmem:[#allocation2 + $0x8] sm:$0xff]  ;;  %2141 = vmatpush3.bf16.msra.mxu1 %v2322_v32  ;;  %v473_v40 = vrot.slane %v2528_v39, %v472_v38  ;;  %p2065_p5 = scmp.ne.s32.totalorder %s2455_s10, 1 }
 0x156   : > { %v469_v35 = vpack.c.bf16 %v2513_v34, %v2511_v33  ;;  %2146 = vmatprep.subr.bf16.mxu1 %v2384_v31 }
 0x158   : > { %2143 = vmatmul.mubr.msk.bf16.vlgmr.msra.gmra.mxu1 %vm486_vm2, %v469_v35 }
 0x159   : > { %2148 = vmatprep.mubr.msk.bf16.mxu1 %vm2385_vm1, %v2384_v31 }
 0x218   : > { %v524_v41 = vpop.f32.mrf.mxu1 }
 0x219   : > { %v525_v42 = vadd.f32 %v524_v41, %v473_v40 }
 0x21a   : > { %v2144_v43 = vpop.f32.mrf.mxu1 }
 0x21b   : > { %v2531_v44 = vpack.c.bf16 %v525_v42, %v525_v42 }
 0x21c   : > { %v527_v45 = vpop.f32.mrf.mxu1 }
 0x21d   : > { %v528_v46 = vadd.f32 %v527_v45, %v473_v40  ;;  %548 = vrot.lane.b32.xlu0 %v2531_v44, %s2386_s16 }
 0x21e   : > { %v2145_v47 = vpop.f32.mrf.mxu1 }
 0x21f   : > { %v2534_v48 = vpack.c.bf16 %v528_v46, %v528_v46 }
 0x221   : > { %598 = vrot.lane.b32.xlu0 %v2534_v48, %s2386_s16 }
 0x28f   : > { %v549_v49 = vpop.permute.xlu0 %548 }
 0x290   : > { %v555_v50 = vsel %vm550_vm3, %v549_v49, 0 }
 0x291   : > { %2147 = vmatpush3.bf16.xpose.msra.mxu1 %v555_v50 }
 0x292   : > { %2158 = vmatprep.subr.bf16.mxu1 %v2384_v31 }
 0x293   : > { %v599_v51 = vpop.permute.xlu0 %598 }
 0x294   : > { %v604_v52 = vsel %vm550_vm3, %v599_v51, 0 }
 0x295   : > { %2153 = vmatpush3.bf16.xpose.msra.mxu0 %v604_v52 }
 0x296   : > { %2164 = vmatprep.subr.bf16.mxu0 %v2384_v31 }
 0x298   : > { %2149 = vmatmul.mubr.msk.bf16.vlgmr.msra.gmra.mxu1 %vm550_vm3, %v2531_v44 }
 0x299   : > { %2160 = vmatprep.mubr.msk.bf16.mxu1 %vm2385_vm1, %v2384_v31 }
 0x29c   : > { %2155 = vmatmul.mubr.msk.bf16.vlgmr.msra.gmra.mxu0 %vm550_vm3, %v2534_v48 }
 0x29d   : > { %2166 = vmatprep.mubr.msk.bf16.mxu0 %vm2385_vm1, %v2384_v31 }
 0x358   : > { %v591_v54 = vpop.f32.mrf.mxu1 }
 0x359   : > { %v592_v55 = vadd.f32 %v2552_v53, %v591_v54 }
 0x35a   : > { %v2150_v56 = vpop.f32.mrf.mxu1 }
 0x35b   : > { %v646_v58 = vsel %vm550_vm3, %v592_v55, -inf }
 0x35c   : > { %v640_v59 = vpop.f32.mrf.mxu0  ;;  %647 = vmax.xlane.f32.xlu1 %v646_v58  ;;  %v594_v60 = vpop.f32.mrf.mxu1 }
 0x35d   : > { %v641_v61 = vadd.f32 %v2558_v57, %v640_v59 }
 0x35e   : > { %v2151_v62 = vpop.f32.mrf.mxu1  ;;  %v2156_v63 = vpop.f32.mrf.mxu0 }
 0x35f   : > { %v649_v0 = vsel %vm550_vm3, %v641_v61, -inf }
 0x360   : > { %v643_v1 = vpop.f32.mrf.mxu0  ;;  %650 = vmax.xlane.f32.xlu1 %v649_v0 }
 0x362   : > { %v2157_v2 = vpop.f32.mrf.mxu0 }
 0x371   : > { %670 = vrot.lane.b32.xlu1 %v2531_v44, %s2387_s27 }
 0x375   : > { %719 = vrot.lane.b32.xlu1 %v2534_v48, %s2387_s27 }
 0x379   : > { %770 = vrot.lane.b32.xlu1 %v2531_v44, %s2388_s28 }
 0x3e5   : > { %v648_v3 = vpop.xlane.xlu1 %647 }
 0x3e6   : > { %v652_v4 = vsub.f32 %v592_v55, %v648_v3 }
 0x3e8   : > { %v654_v5 = vmul.f32 1.442695, %v652_v4 }
 0x3e9   : > { %v651_v6 = vpop.xlane.xlu1 %650 }
 0x3ea   : > { %2329 = vpow2.f32 %v654_v5  ;;  %v653_v7 = vsub.f32 %v641_v61, %v651_v6 }
 0x3ec   : > { %v656_v8 = vmul.f32 1.442695, %v653_v7 }
 0x3ed   : > { %v671_v9 = vpop.permute.xlu1 %670 }
 0x3ee   : > { %2331 = vpow2.f32 %v656_v8  ;;  %v677_v10 = vsel %vm675_vm4, %v671_v9, 0 }
 0x3ef   : > { %2159 = vmatpush3.bf16.msra.mxu1 %v677_v10 }
 0x3f0   : > { %2170 = vmatprep.subr.bf16.mxu1 %v2384_v31 }
 0x3f1   : > { %v720_v11 = vpop.permute.xlu1 %719 }
 0x3f2   : > { %v725_v12 = vsel %vm675_vm4, %v720_v11, 0 }
 0x3f3   : > { %2165 = vmatpush3.bf16.msra.mxu0 %v725_v12 }
 0x3f4   : > { %2176 = vmatprep.subr.bf16.mxu0 %v2384_v31 }
 0x3f5   : > { %v771_v17 = vpop.permute.xlu1 %770 }
 0x3f6   : > { %v776_v24 = vsel %vm550_vm3, %v771_v17, 0  ;;  %v453_v17 = vld [vmem:[%s2469_s19] sm:$0xf] }
 0x3f7   : > { %v2330_v13 = vpop.eup %2329 }
 0x3f8   : > { %v658_v14 = vsel %vm550_vm3, %v2330_v13, 0.0 }
 0x3f9   : > { %659 = vadd.xlane.f32.xlu0 %v658_v14 }
 0x3fb   : > { %v2332_v15 = vpop.eup %2331 }
 0x3fc   : > { %v661_v16 = vsel %vm550_vm3, %v2332_v15, 0.0 }
 0x3fd   : > { %662 = vadd.xlane.f32.xlu1 %v661_v16 }
 0x40e   : > { %820 = vrot.lane.b32.xlu1 %v2534_v48, %s2388_s28 }
 0x40f   : > { %768 = vrot.lane.b32.xlu0 %v2531_v44, %s2389_s14 }
 0x412   : > { %818 = vrot.lane.b32.xlu1 %v2534_v48, %s2389_s14 }
 0x482   : > { %v660_v18 = vpop.xlane.xlu0 %659 }
 0x483   : > { %2333 = vrcp.f32 %v660_v18 }
 0x486   : > { %v663_v19 = vpop.xlane.xlu1 %662  ;;  %v769_v29 = vpop.permute.xlu0 %768 }
 0x487   : > { %2335 = vrcp.f32 %v663_v19 }
 0x48a   : > { %v821_v26 = vpop.permute.xlu1 %820 }
 0x48b   : > { %v826_v28 = vsel %vm550_vm3, %v821_v26, 0 }
 0x48e   : > { %v819_v30 = vpop.permute.xlu1 %818 }
 0x490   : > { %v2334_v20 = vpop.eup %2333 }
 0x491   : > { %v666_v21 = vmul.f32 %v2334_v20, %v2330_v13  ;;  %v1040_v20 = vsel %vm675_vm4, %v453_v17, 0 }
 0x493   : > { %v668_v22 = vpack.c.bf16 %v666_v21, %v666_v21 }
 0x494   : > { %v2336_v23 = vpop.eup %2335 }
 0x495   : > { %2161 = vmatmul.mubr.msk.bf16.vlgmr.msra.gmra.mxu1 %vm550_vm3, %v668_v22  ;;  %v667_v25 = vmul.f32 %v2336_v23, %v2332_v15 }
 0x496   : > { %2171 = vmatpush3.bf16.xpose.msra.mxu1 %v776_v24  ;;  %2172 = vmatprep.mubr.msk.bf16.mxu1 %vm2385_vm1, %v2384_v31 }
 0x497   : > { %v669_v27 = vpack.c.bf16 %v667_v25, %v667_v25  ;;  %2182 = vmatprep.subr.bf16.mxu1 %v2384_v31  ;;  %v454_v25 = vld [vmem:[%s2469_s19 + $0x4] sm:$0xf] }
 0x498   : > { %v993_v26 = vsel %vm675_vm4, %v454_v25, 0 }
 0x499   : > { %2167 = vmatmul.mubr.msk.bf16.vlgmr.msra.gmra.mxu0 %vm550_vm3, %v669_v27 }
 0x49a   : > { %2177 = vmatpush3.bf16.xpose.msra.mxu0 %v826_v28  ;;  %2178 = vmatprep.mubr.msk.bf16.mxu0 %vm2385_vm1, %v2384_v31 }
 0x49b   : > { %2188 = vmatprep.subr.bf16.mxu0 %v2384_v31 }
 0x49d   : > { %2173 = vmatmul.mubr.msk.bf16.vlgmr.msra.gmra.mxu1 %vm550_vm3, %v769_v29 }
 0x49e   : > { %2184 = vmatprep.mubr.msk.bf16.mxu1 %vm2385_vm1, %v2384_v31 }
 0x4a1   : > { %2179 = vmatmul.mubr.msk.bf16.vlgmr.msra.gmra.mxu0 %vm550_vm3, %v819_v30 }
 0x4a2   : > { %2190 = vmatprep.mubr.msk.bf16.mxu0 %vm2385_vm1, %v2384_v31 }
 0x555   : > { %v2591_v32 = vpop.f32.mrf.mxu1 }
 0x557   : > { %v2162_v35 = vpop.f32.mrf.mxu1 }
 0x559   : > { %v716_v36 = vpop.f32.mrf.mxu1  ;;  %v2593_v38 = vpop.f32.mrf.mxu0 }
 0x55a   : > { %v767_v40 = vpack.c.bf16 %v2593_v38, %v2591_v32 }
 0x55b   : > { %v2163_v41 = vpop.f32.mrf.mxu1  ;;  %v2168_v42 = vpop.f32.mrf.mxu0 }
 0x55d   : > { %v764_v43 = vpop.f32.mrf.mxu0  ;;  %v812_v45 = vpop.f32.mrf.mxu1 }
 0x55e   : > { %v813_v46 = vadd.f32 %v2552_v53, %v812_v45 }
 0x55f   : > { %v2169_v47 = vpop.f32.mrf.mxu0  ;;  %v2174_v49 = vpop.f32.mrf.mxu1 }
 0x560   : > { %v868_v50 = vsel %vm550_vm3, %v813_v46, -inf }
 0x561   : > { %v862_v51 = vpop.f32.mrf.mxu0  ;;  %869 = vmax.xlane.f32.xlu1 %v868_v50  ;;  %v815_v52 = vpop.f32.mrf.mxu1 }
 0x562   : > { %v863_v54 = vadd.f32 %v2558_v57, %v862_v51 }
 0x563   : > { %v2175_v55 = vpop.f32.mrf.mxu1  ;;  %v2180_v56 = vpop.f32.mrf.mxu0 }
 0x564   : > { %v871_v58 = vsel %vm550_vm3, %v863_v54, -inf }
 0x565   : > { %872 = vmax.xlane.f32.xlu0 %v871_v58  ;;  %v865_v59 = vpop.f32.mrf.mxu0 }
 0x567   : > { %v2181_v60 = vpop.f32.mrf.mxu0 }
 0x57b   : > { %940 = vrot.lane.b32.xlu0 %v2534_v48, %s2390_s15 }
 0x57f   : > { %1083 = vrot.lane.b32.xlu0 %v2531_v44, %s2391_s12 }
 0x5ea   : > { %v870_v61 = vpop.xlane.xlu1 %869 }
 0x5eb   : > { %v874_v62 = vsub.f32 %v813_v46, %v870_v61 }
 0x5ed   : > { %v876_v63 = vmul.f32 1.442695, %v874_v62 }
 0x5ee   : > { %v873_v0 = vpop.xlane.xlu0 %872 }
 0x5ef   : > { %2337 = vpow2.f32 %v876_v63  ;;  %v875_v1 = vsub.f32 %v863_v54, %v873_v0 }
 0x5f1   : > { %v878_v2 = vmul.f32 1.442695, %v875_v1 }
 0x5f2   : > { %v941_v3 = vpop.permute.xlu0 %940 }
 0x5f3   : > { %2339 = vpow2.f32 %v878_v2  ;;  %v946_v4 = vsel %vm675_vm4, %v941_v3, 0 }
 0x5f4   : > { %2189 = vmatpush3.bf16.msra.mxu0 %v946_v4 }
 0x5f5   : > { %2200 = vmatprep.subr.bf16.mxu0 %v2384_v31 }
 0x5f6   : > { %v1084_v43 = vpop.permute.xlu0 %1083 }
 0x5fc   : > { %v2338_v5 = vpop.eup %2337 }
 0x5fd   : > { %v880_v6 = vsel %vm550_vm3, %v2338_v5, 0.0 }
 0x5fe   : > { %881 = vadd.xlane.f32.xlu1 %v880_v6 }
 0x600   : > { %v2340_v7 = vpop.eup %2339 }
 0x601   : > { %v883_v8 = vsel %vm550_vm3, %v2340_v7, 0.0 }
 0x602   : > { %884 = vadd.xlane.f32.xlu1 %v883_v8 }
 0x613   : > { %892 = vrot.lane.b32.xlu1 %v2531_v44, %s2390_s15 }
 0x617   : > { %1085 = vrot.lane.b32.xlu1 %v2531_v44, %s2392_s17 }
 0x61b   : > { %1135 = vrot.lane.b32.xlu1 %v2534_v48, %s2392_s17 }
 0x61f   : > { %1133 = vrot.lane.b32.xlu1 %v2534_v48, %s2391_s12 }
 0x687   : > { %v882_v9 = vpop.xlane.xlu1 %881 }
 0x688   : > { %2341 = vrcp.f32 %v882_v9 }
 0x68b   : > { %v885_v10 = vpop.xlane.xlu1 %884 }
 0x68c   : > { %2343 = vrcp.f32 %v885_v10 }
 0x68f   : > { %v893_v11 = vpop.permute.xlu1 %892 }
 0x690   : > { %v898_v12 = vsel %vm675_vm4, %v893_v11, 0 }
 0x691   : > { %2183 = vmatpush3.bf16.msra.mxu1 %v898_v12 }
 0x692   : > { %2194 = vmatprep.subr.bf16.mxu1 %v2384_v31 }
 0x693   : > { %v1086_v21 = vpop.permute.xlu1 %1085 }
 0x694   : > { %v1091_v38 = vsel %vm550_vm3, %v1086_v21, 0 }
 0x695   : > { %v2342_v13 = vpop.eup %2341 }
 0x696   : > { %v888_v14 = vmul.f32 %v2342_v13, %v2338_v5 }
 0x697   : > { %v1136_v22 = vpop.permute.xlu1 %1135 }
 0x698   : > { %v890_v15 = vpack.c.bf16 %v888_v14, %v888_v14  ;;  %v1141_v23 = vsel %vm550_vm3, %v1136_v22, 0 }
 0x699   : > { %v2344_v16 = vpop.eup %2343 }
 0x69a   : > { %2185 = vmatmul.mubr.msk.bf16.vlgmr.msra.gmra.mxu1 %vm550_vm3, %v890_v15  ;;  %v889_v18 = vmul.f32 %v2344_v16, %v2340_v7 }
 0x69b   : > { %2196 = vmatprep.mubr.msk.bf16.mxu1 %vm2385_vm1, %v2384_v31  ;;  %v1134_v24 = vpop.permute.xlu1 %1133  ;;  %2195 = vmatpush3.bf16.msra.mxu1 %v993_v26 }
 0x69c   : > { %v891_v19 = vpack.c.bf16 %v889_v18, %v889_v18  ;;  %2206 = vmatprep.subr.bf16.mxu1 %v2384_v31 }
 0x69e   : > { %2191 = vmatmul.mubr.msk.bf16.vlgmr.msra.gmra.mxu0 %vm550_vm3, %v891_v19 }
 0x69f   : > { %2201 = vmatpush3.bf16.msra.mxu0 %v1040_v20  ;;  %2202 = vmatprep.mubr.msk.bf16.mxu0 %vm2385_vm1, %v2384_v31 }
 0x6a0   : > { %2212 = vmatprep.subr.bf16.mxu0 %v2384_v31 }
 0x6a6   : > { %2203 = vmatmul.mubr.msk.bf16.vlgmr.msra.gmra.mxu0 %vm550_vm3, %v767_v40 }
 0x6a7   : > { %2213 = vmatpush3.bf16.xpose.msra.mxu0 %v1141_v23  ;;  %2214 = vmatprep.mubr.msk.bf16.mxu0 %vm2385_vm1, %v2384_v31 }
 0x6a8   : > { %2224 = vmatprep.subr.bf16.mxu0 %v2384_v31 }
 0x6ae   : > { %2215 = vmatmul.mubr.msk.bf16.vlgmr.msra.gmra.mxu0 %vm550_vm3, %v1134_v24 }
 0x6af   : > { %2226 = vmatprep.mubr.msk.bf16.mxu0 %vm2385_vm1, %v2384_v31 }
 0x75a   : > { %v934_v27 = vpop.f32.mrf.mxu1 }
 0x75c   : > { %v2186_v28 = vpop.f32.mrf.mxu1 }
 0x75d   : > { %v455_v28 = vld [vmem:[%s2469_s19 + $0x8] sm:$0xf] }
 0x75e   : > { %v937_v29 = vpop.f32.mrf.mxu1  ;;  %v982_v30 = vpop.f32.mrf.mxu0 }
 0x75f   : > { %v988_v32 = vpack.c.bf16 %v982_v30, %v934_v27  ;;  %v1308_v29 = vsel %vm675_vm4, %v455_v28, 0 }
 0x760   : > { %v2187_v35 = vpop.f32.mrf.mxu1  ;;  %v2192_v36 = vpop.f32.mrf.mxu0 }
 0x761   : > { %2197 = vmatmul.mubr.msk.bf16.vlgmr.msra.gmra.mxu1 %vm550_vm3, %v988_v32 }
 0x762   : > { %2207 = vmatpush3.bf16.xpose.msra.mxu1 %v1091_v38  ;;  %v985_v40 = vpop.f32.mrf.mxu0  ;;  %2208 = vmatprep.mubr.msk.bf16.mxu1 %vm2385_vm1, %v2384_v31 }
 0x763   : > { %2218 = vmatprep.subr.bf16.mxu1 %v2384_v31 }
 0x764   : > { %v2193_v41 = vpop.f32.mrf.mxu0 }
 0x766   : > { %v2641_v42 = vpop.f32.mrf.mxu0 }
 0x768   : > { %v2204_v45 = vpop.f32.mrf.mxu0 }
 0x769   : > { %2209 = vmatmul.mubr.msk.bf16.vlgmr.msra.gmra.mxu1 %vm550_vm3, %v1084_v43 }
 0x76a   : > { %v2644_v46 = vpop.f32.mrf.mxu0  ;;  %2220 = vmatprep.mubr.msk.bf16.mxu1 %vm2385_vm1, %v2384_v31 }
 0x76c   : > { %v2205_v47 = vpop.f32.mrf.mxu0 }
 0x76e   : > { %v1177_v49 = vpop.f32.mrf.mxu0 }
 0x76f   : > { %v1178_v50 = vadd.f32 %v2558_v57, %v1177_v49 }
 0x770   : > { %v2216_v51 = vpop.f32.mrf.mxu0 }
 0x771   : > { %v1186_v52 = vsel %vm550_vm3, %v1178_v50, -inf }
 0x772   : > { %1187 = vmax.xlane.f32.xlu1 %v1186_v52  ;;  %v1180_v54 = vpop.f32.mrf.mxu0 }
 0x774   : > { %v2217_v55 = vpop.f32.mrf.mxu0 }
 0x783   : > { %1207 = vrot.lane.b32.xlu1 %v2531_v44, %s2393_s11 }
 0x787   : > { %1355 = vrot.lane.b32.xlu1 %v2531_v44, %s2394_s13 }
 0x78b   : > { %1405 = vrot.lane.b32.xlu1 %v2534_v48, %s2394_s13 }
 0x78f   : > { %1403 = vrot.lane.b32.xlu1 %v2534_v48, %s2395_s18 }
 0x7fb   : > { %v1188_v56 = vpop.xlane.xlu1 %1187 }
 0x7fc   : > { %v1190_v60 = vsub.f32 %v1178_v50, %v1188_v56 }
 0x7fe   : > { %v1193_v61 = vmul.f32 1.442695, %v1190_v60 }
 0x7ff   : > { %v1208_v58 = vpop.permute.xlu1 %1207 }
 0x800   : > { %v1213_v59 = vsel %vm675_vm4, %v1208_v58, 0  ;;  %2345 = vpow2.f32 %v1193_v61 }
 0x801   : > { %2219 = vmatpush3.bf16.msra.mxu1 %v1213_v59 }
 0x802   : > { %2230 = vmatprep.subr.bf16.mxu1 %v2384_v31 }
 0x803   : > { %v1356_v21 = vpop.permute.xlu1 %1355 }
 0x804   : > { %v1361_v23 = vsel %vm550_vm3, %v1356_v21, 0 }
 0x807   : > { %v1406_v40 = vpop.permute.xlu1 %1405 }
 0x808   : > { %v1411_v52 = vsel %vm550_vm3, %v1406_v40, 0 }
 0x80b   : > { %v1404_v56 = vpop.permute.xlu1 %1403 }
 0x80d   : > { %v2346_v6 = vpop.eup %2345 }
 0x80e   : > { %v1198_v9 = vsel %vm550_vm3, %v2346_v6, 0.0 }
 0x821   : > { %v2658_v62 = vpop.f32.mrf.mxu1 }
 0x823   : > { %v2198_v63 = vpop.f32.mrf.mxu1 }
 0x825   : > { %v2660_v0 = vpop.f32.mrf.mxu1 }
 0x827   : > { %v2199_v1 = vpop.f32.mrf.mxu1 }
 0x828   : > { %v1077_v1 = vadd.f32 %v2641_v42, %v2658_v62 }
 0x829   : > { %v1127_v2 = vpop.f32.mrf.mxu1 }
 0x82a   : > { %v1128_v3 = vadd.f32 %v2552_v53, %v1127_v2 }
 0x82b   : > { %v2210_v4 = vpop.f32.mrf.mxu1 }
 0x82c   : > { %v1183_v5 = vsel %vm550_vm3, %v1128_v3, -inf }
 0x82d   : > { %1184 = vmax.xlane.f32.xlu0 %v1183_v5  ;;  %v1130_v7 = vpop.f32.mrf.mxu1  ;;  %v1080_v5 = vadd.f32 %v2644_v46, %v2660_v0 }
 0x82f   : > { %v2211_v8 = vpop.f32.mrf.mxu1 }
 0x831   : > { %1199 = vadd.xlane.f32.xlu0 %v1198_v9 }
 0x8b6   : > { %v1185_v10 = vpop.xlane.xlu0 %1184 }
 0x8b7   : > { %v1189_v11 = vsub.f32 %v1128_v3, %v1185_v10 }
 0x8b9   : > { %v1191_v12 = vmul.f32 1.442695, %v1189_v11 }
 0x8ba   : > { %v1200_v15 = vpop.xlane.xlu0 %1199 }
 0x8bb   : > { %2347 = vpow2.f32 %v1191_v12 }
 0x8bc   : > { %2349 = vrcp.f32 %v1200_v15 }
 0x8c8   : > { %v2348_v13 = vpop.eup %2347 }
 0x8c9   : > { %v1195_v14 = vsel %vm550_vm3, %v2348_v13, 0.0  ;;  %v2350_v16 = vpop.eup %2349 }
 0x8ca   : > { %1196 = vadd.xlane.f32.xlu0 %v1195_v14  ;;  %v1204_v18 = vmul.f32 %v2350_v16, %v2346_v6 }
 0x8cc   : > { %v1206_v22 = vpack.c.bf16 %v1204_v18, %v1204_v18 }
 0x8e0   : > { %1255 = vrot.lane.b32.xlu0 %v2534_v48, %s2393_s11 }
 0x8e4   : > { %1353 = vrot.lane.b32.xlu0 %v2531_v44, %s2395_s18 }
 0x953   : > { %v1197_v17 = vpop.xlane.xlu0 %1196 }
 0x954   : > { %2351 = vrcp.f32 %v1197_v17 }
 0x957   : > { %v1256_v19 = vpop.permute.xlu0 %1255 }
 0x958   : > { %v1261_v20 = vsel %vm675_vm4, %v1256_v19, 0 }
 0x959   : > { %2225 = vmatpush3.bf16.msra.mxu0 %v1261_v20  ;;  %v456_v20 = vld [vmem:[%s2469_s19 + $0xc] sm:$0xf] }
 0x95a   : > { %2236 = vmatprep.subr.bf16.mxu0 %v2384_v31  ;;  %v1578_v21 = vsel %vm675_vm4, %v456_v20, 0 }
 0x95b   : > { %v1354_v26 = vpop.permute.xlu0 %1353 }
 0x95c   : > { %2227 = vmatmul.mubr.msk.bf16.vlgmr.msra.gmra.mxu0 %vm550_vm3, %v1206_v22 }
 0x95d   : > { %2237 = vmatpush3.bf16.xpose.msra.mxu0 %v1361_v23  ;;  %2238 = vmatprep.mubr.msk.bf16.mxu0 %vm2385_vm1, %v2384_v31 }
 0x95e   : > { %2248 = vmatprep.subr.bf16.mxu0 %v2384_v31 }
 0x961   : > { %v2352_v24 = vpop.eup %2351 }
 0x962   : > { %v1203_v25 = vmul.f32 %v2352_v24, %v2348_v13 }
 0x964   : > { %2239 = vmatmul.mubr.msk.bf16.vlgmr.msra.gmra.mxu0 %vm550_vm3, %v1354_v26  ;;  %v1205_v27 = vpack.c.bf16 %v1203_v25, %v1203_v25 }
 0x965   : > { %2250 = vmatprep.mubr.msk.bf16.mxu0 %vm2385_vm1, %v2384_v31 }
 0x966   : > { %2221 = vmatmul.mubr.msk.bf16.vlgmr.msra.gmra.mxu1 %vm550_vm3, %v1205_v27 }
 0x967   : > { %2232 = vmatprep.mubr.msk.bf16.mxu1 %vm2385_vm1, %v2384_v31  ;;  %2231 = vmatpush3.bf16.msra.mxu1 %v1308_v29 }
 0x968   : > { %2242 = vmatprep.subr.bf16.mxu1 %v2384_v31 }
 0xa1c   : > { %v1297_v30 = vpop.f32.mrf.mxu0 }
 0xa1e   : > { %v2228_v32 = vpop.f32.mrf.mxu0 }
 0xa20   : > { %v1300_v35 = vpop.f32.mrf.mxu0 }
 0xa22   : > { %v2229_v36 = vpop.f32.mrf.mxu0 }
 0xa24   : > { %v1397_v38 = vpop.f32.mrf.mxu0 }
 0xa25   : > { %v1398_v41 = vadd.f32 %v2552_v53, %v1397_v38 }
 0xa26   : > { %v1249_v43 = vpop.f32.mrf.mxu1  ;;  %v2240_v45 = vpop.f32.mrf.mxu0 }
 0xa27   : > { %v1303_v47 = vpack.c.bf16 %v1297_v30, %v1249_v43  ;;  %v1453_v49 = vsel %vm550_vm3, %v1398_v41, -inf }
 0xa28   : > { %1454 = vmax.xlane.f32.xlu0 %v1453_v49  ;;  %v2222_v50 = vpop.f32.mrf.mxu1  ;;  %v1400_v51 = vpop.f32.mrf.mxu0 }
 0xa29   : > { %2233 = vmatmul.mubr.msk.bf16.vlgmr.msra.gmra.mxu1 %vm550_vm3, %v1303_v47 }
 0xa2a   : > { %2243 = vmatpush3.bf16.xpose.msra.mxu1 %v1411_v52  ;;  %v1252_v54 = vpop.f32.mrf.mxu1  ;;  %v2241_v55 = vpop.f32.mrf.mxu0  ;;  %2244 = vmatprep.mubr.msk.bf16.mxu1 %vm2385_vm1, %v2384_v31 }
 0xa2b   : > { %2254 = vmatprep.subr.bf16.mxu1 %v2384_v31 }
 0xa2c   : > { %v2223_v53 = vpop.f32.mrf.mxu1 }
 0xa31   : > { %2245 = vmatmul.mubr.msk.bf16.vlgmr.msra.gmra.mxu1 %vm550_vm3, %v1404_v56 }
 0xa32   : > { %2256 = vmatprep.mubr.msk.bf16.mxu1 %vm2385_vm1, %v2384_v31 }
 0xab1   : > { %v1455_v58 = vpop.xlane.xlu0 %1454 }
 0xab2   : > { %v1459_v59 = vsub.f32 %v1398_v41, %v1455_v58  ;;  %v1625_v41 = vsub.s32 1, %v2524_v37 }
 0xab4   : > { %v1461_v60 = vmul.f32 1.442695, %v1459_v59  ;;  %v1626_v43 = vrot.slane %v2528_v39, %v1625_v41 }
 0xab6   : > { %2353 = vpow2.f32 %v1461_v60 }
 0xac3   : > { %v2354_v61 = vpop.eup %2353 }
 0xac4   : > { %v1465_v63 = vsel %vm550_vm3, %v2354_v61, 0.0 }
 0xac5   : > { %1466 = vadd.xlane.f32.xlu0 %v1465_v63 }
 0xae9   : > { %v1344_v2 = vpop.f32.mrf.mxu1 }
 0xaea   : > { %v2699_v3 = vadd.f32 %v1344_v2, %v1077_v1 }
 0xaeb   : > { %v2234_v4 = vpop.f32.mrf.mxu1 }
 0xaed   : > { %v1347_v6 = vpop.f32.mrf.mxu1 }
 0xaee   : > { %v2703_v7 = vadd.f32 %v1347_v6, %v1080_v5 }
 0xaef   : > { %v2235_v8 = vpop.f32.mrf.mxu1 }
 0xaf1   : > { %v1447_v9 = vpop.f32.mrf.mxu1 }
 0xaf2   : > { %v1448_v10 = vadd.f32 %v2558_v57, %v1447_v9 }
 0xaf3   : > { %v2246_v11 = vpop.f32.mrf.mxu1 }
 0xaf4   : > { %v1456_v12 = vsel %vm550_vm3, %v1448_v10, -inf }
 0xaf5   : > { %1457 = vmax.xlane.f32.xlu1 %v1456_v12  ;;  %v1450_v13 = vpop.f32.mrf.mxu1 }
 0xaf7   : > { %v2247_v42 = vpop.f32.mrf.mxu1 }
 0xaf8   : > { %v1660_v42 = vsub.s32 2, %v2524_v37 }
 0xb06   : > { %1477 = vrot.lane.b32.xlu1 %v2531_v44, %s2396_s20 }
 0xb4e   : > { %v1467_v62 = vpop.xlane.xlu0 %1466 }
 0xb4f   : > { %2355 = vrcp.f32 %v1467_v62 }
 0xb5c   : > { %v2356_v14 = vpop.eup %2355 }
 0xb5d   : > { %v1473_v16 = vmul.f32 %v2356_v14, %v2354_v61 }
 0xb5f   : > { %v1475_v18 = vpack.c.bf16 %v1473_v16, %v1473_v16 }
 0xb7e   : > { %v1458_v46 = vpop.xlane.xlu1 %1457 }
 0xb7f   : > { %v1460_v0 = vsub.f32 %v1448_v10, %v1458_v46  ;;  %v1661_v46 = vrot.slane %v2528_v39, %v1660_v42 }
 0xb81   : > { %v1463_v15 = vmul.f32 1.442695, %v1460_v0  ;;  %v1666_v0 = vsub.s32 3, %v2524_v37 }
 0xb82   : > { %v1478_v17 = vpop.permute.xlu1 %1477 }
 0xb83   : > { %2357 = vpow2.f32 %v1463_v15  ;;  %v1483_v57 = vsel %vm675_vm4, %v1478_v17, 0 }
 0xb84   : > { %2249 = vmatpush3.bf16.msra.mxu0 %v1483_v57  ;;  %v1667_v57 = vrot.slane %v2528_v39, %v1666_v0 }
 0xb85   : > { %2260 = vmatprep.subr.bf16.mxu0 %v2384_v31 }
 0xb87   : > { %2251 = vmatmul.mubr.msk.bf16.vlgmr.msra.gmra.mxu0 %vm550_vm3, %v1475_v18 }
 0xb88   : > { %2262 = vmatprep.mubr.msk.bf16.mxu0 %vm2385_vm1, %v2384_v31  ;;  %2261 = vmatpush3.bf16.msra.mxu0 %v1578_v21  ;;  %v2325_v21 = vld [vmem:[%s2479_s25 + $0x18] sm:$0xff]  }
 0xb89   : > { %2274 = vmatprep.subr.bf16.mxu0 %v2384_v31 }
 0xb90   : > { %v2358_v44 = vpop.eup %2357 }
 0xb91   : > { %v1468_v19 = vsel %vm550_vm3, %v2358_v44, 0.0 }
 0xb92   : > { %1469 = vadd.xlane.f32.xlu0 %v1468_v19 }
 0xba8   : > { %1525 = vrot.lane.b32.xlu0 %v2534_v48, %s2396_s20 }
 0xc1b   : > { %v1470_v22 = vpop.xlane.xlu0 %1469 }
 0xc1c   : > { %2359 = vrcp.f32 %v1470_v22  ;;  %v2326_v22 = vld [vmem:[%s2479_s25 + $0x10] sm:$0xff]  }
 0xc1f   : > { %v1526_v23 = vpop.permute.xlu0 %1525 }
 0xc20   : > { %v1531_v24 = vsel %vm675_vm4, %v1526_v23, 0  ;;  %v2327_v23 = vld [vmem:[%s2479_s25 + $0x8] sm:$0xff]  }
 0xc21   : > { %2255 = vmatpush3.bf16.msra.mxu1 %v1531_v24  ;;  %v2328_v24 = vld [vmem:[%s2479_s25] sm:$0xff]  }
 0xc22   : > { %2266 = vmatprep.subr.bf16.mxu1 %v2384_v31 }
 0xc29   : > { %v2360_v25 = vpop.eup %2359 }
 0xc2a   : > { %v1474_v26 = vmul.f32 %v2360_v25, %v2358_v44  ;;  %v1673_v25 = vsub.s32 4, %v2524_v37 }
 0xc2c   : > { %v1476_v27 = vpack.c.bf16 %v1474_v26, %v1474_v26  ;;  %v1674_v26 = vrot.slane %v2528_v39, %v1673_v25 }
 0xc2e   : > { %2257 = vmatmul.mubr.msk.bf16.vlgmr.msra.gmra.mxu1 %vm550_vm3, %v1476_v27 }
 0xc2f   : > { %2270 = vmatprep.mubr.msk.bf16.mxu1 %vm2385_vm1, %v2384_v31 }
 0xc47   : > { %v1519_v48 = vpop.f32.mrf.mxu0 }
 0xc49   : > { %v2252_v28 = vpop.f32.mrf.mxu0 }
 0xc4b   : > { %v1522_v29 = vpop.f32.mrf.mxu0 }
 0xc4d   : > { %v2253_v30 = vpop.f32.mrf.mxu0 }
 0xcee   : > { %v1567_v32 = vpop.f32.mrf.mxu1 }
 0xcef   : > { %v1573_v35 = vpack.c.bf16 %v1567_v32, %v1519_v48 }
 0xcf0   : > { %v2258_v36 = vpop.f32.mrf.mxu1 }
 0xcf1   : > { %2263 = vmatmul.mubr.msk.bf16.vlgmr.msra.gmra.mxu0 %vm550_vm3, %v1573_v35 }
 0xcf2   : > { %v1570_v38 = vpop.f32.mrf.mxu1  ;;  %2282 = vmatprep.mubr.msk.bf16.mxu0 %vm2385_vm1, %v2384_v31  ;;  %2275 = vmatpush3.bf16.msra.mxu0 %v2325_v21 }
 0xcf3   : > { %2276 = vmatprep.subr.bf16.mxu0 %v2384_v31 }
 0xcf4   : > { %v2259_v40 = vpop.f32.mrf.mxu1 }
 0xcf6   : > { %2277 = vmatpush3.bf16.msra.mxu0 %v2326_v22  ;;  %v2373_v22 = vld [vmem:[%s2484_s29] sm:$0xff] }
 0xcf7   : > { %2278 = vmatprep.subr.bf16.mxu0 %v2384_v31 }
 0xcfa   : > { %2279 = vmatpush3.bf16.msra.mxu0 %v2327_v23 }
 0xcfb   : > { %2280 = vmatprep.subr.bf16.mxu0 %v2384_v31 }
 0xcfe   : > { %2281 = vmatpush3.bf16.msra.mxu0 %v2328_v24 }
 0xdb1   : > { %v1614_v45 = vpop.f32.mrf.mxu0 }
 0xdb2   : > { %v1621_v47 = vadd.f32 %v1614_v45, %v2699_v3 }
 0xdb3   : > { %v2264_v49 = vpop.f32.mrf.mxu0 }
 0xdb4   : > { %v1627_v50 = vadd.f32 %v1626_v43, %v1621_v47 }
 0xdb5   : > { %v1617_v51 = vpop.f32.mrf.mxu0 }
 0xdb6   : > { %v1622_v52 = vadd.f32 %v1617_v51, %v2703_v7  ;;  %v1629_v54 = vadd.f32 %v1627_v50, %v2511_v33  ;;  %v2323_v7 = vld [vmem:[%s2474_s22 + $0x8] sm:$0xff]  }
 0xdb7   : > { %v2265_v55 = vpop.f32.mrf.mxu0  ;;  %2267 = vmatpush3.bf16.msra.mxu1 %v2323_v7 }
 0xdb8   : > { %v1628_v53 = vadd.f32 %v1626_v43, %v1622_v52  ;;  %v1631_v56 = vsel %vm486_vm2, %v1629_v54, 0.0  ;;  %2268 = vmatprep.subr.bf16.mxu1 %v2384_v31 }
 0xdb9   : > { %1632 = vadd.xlane.f32.xlu1 %v1631_v56 }
 0xdba   : > { %v1630_v58 = vadd.f32 %v1628_v53, %v2513_v34  ;;  %v2324_v34 = vld [vmem:[%s2474_s22] sm:$0xff]  }
 0xdbb   : > { %2269 = vmatpush3.bf16.msra.mxu1 %v2324_v34 }
 0xdbc   : > { %v1634_v59 = vsel %vm486_vm2, %v1630_v58, 0.0 }
 0xdbd   : > { %1635 = vadd.xlane.f32.xlu0 %v1634_v59 }
 0xe42   : > { %v1633_v60 = vpop.xlane.xlu1 %1632 }
 0xe43   : > { %v1638_v61 = vmul.f32 0.03125, %v1633_v60  ;;  %v1752_v60 = vsub.s32 5, %v2524_v37 }
 0xe45   : > { %v1640_v63 = vsub.f32 %v1629_v54, %v1638_v61  ;;  %v1753_v61 = vrot.slane %v2528_v39, %v1752_v60 }
 0xe46   : > { %v1636_v1 = vpop.xlane.xlu0 %1635 }
 0xe47   : > { %v1639_v2 = vmul.f32 0.03125, %v1636_v1  ;;  %v1642_v3 = vmul.f32 %v1640_v63, %v1640_v63 }
 0xe49   : > { %v1641_v4 = vsub.f32 %v1630_v58, %v1639_v2  ;;  %v1644_v33 = vsel %vm486_vm2, %v1642_v3, 0.0 }
 0xe4a   : > { %1645 = vadd.xlane.f32.xlu1 %v1644_v33 }
 0xe4b   : > { %v1643_v5 = vmul.f32 %v1641_v4, %v1641_v4 }
 0xe4d   : > { %v1647_v6 = vsel %vm486_vm2, %v1643_v5, 0.0 }
 0xe4e   : > { %1648 = vadd.xlane.f32.xlu0 %v1647_v6 }
 0xed3   : > { %v1646_v8 = vpop.xlane.xlu1 %1645 }
 0xed4   : > { %v1650_v9 = vmul.f32 0.03125, %v1646_v8 }
 0xed6   : > { %v1652_v10 = vadd.f32 1e-12, %v1650_v9 }
 0xed7   : > { %v1649_v11 = vpop.xlane.xlu0 %1648 }
 0xed8   : > { %2361 = vrsqrt.f32 %v1652_v10  ;;  %v1651_v12 = vmul.f32 0.03125, %v1649_v11 }
 0xeda   : > { %v1653_v13 = vadd.f32 1e-12, %v1651_v12 }
 0xedc   : > { %2363 = vrsqrt.f32 %v1653_v13 }
 0xee5   : > { %v2362_v62 = vpop.eup %2361 }
 0xee6   : > { %v1656_v14 = vmul.f32 %v2362_v62, %v1640_v63 }
 0xee8   : > { %v1662_v17 = vmul.f32 %v1661_v46, %v1656_v14 }
 0xee9   : > { %v2364_v15 = vpop.eup %2363 }
 0xeea   : > { %v1657_v16 = vmul.f32 %v2364_v15, %v1641_v4  ;;  %v1668_v44 = vadd.f32 %v1667_v57, %v1662_v17 }
 0xeec   : > { %v1663_v18 = vmul.f32 %v1661_v46, %v1657_v16 }
 0xeee   : > { %v1669_v19 = vadd.f32 %v1667_v57, %v1663_v18 }
 0xef0   : > { %v1670_v20 = vpack.c.bf16 %v1669_v19, %v1668_v44 }
 0xef2   : > { %2271 = vmatmul.mubr.msk.bf16.vlgmr.msra.gmra.mxu1 %vm486_vm2, %v1670_v20 }
 0xfb2   : > { %v1724_v27 = vpop.f32.mrf.mxu1 }
 0xfb3   : > { %v1725_v48 = vadd.f32 %v1724_v27, %v1674_v26 }
 0xfb4   : > { %v2272_v28 = vpop.f32.mrf.mxu1 }
 0xfb5   : > { %v1731_v29 = vmul.f32 %v1725_v48, %v1725_v48 }
 0xfb6   : > { %v1727_v30 = vpop.f32.mrf.mxu1 }
 0xfb7   : > { %v1733_v32 = vmul.f32 %v1731_v29, %v1725_v48  ;;  %v1728_v35 = vadd.f32 %v1727_v30, %v1674_v26 }
 0xfb8   : > { %v2273_v36 = vpop.f32.mrf.mxu1 }
 0xfb9   : > { %v1735_v38 = vmul.f32 0.044715, %v1733_v32  ;;  %v1732_v40 = vmul.f32 %v1728_v35, %v1728_v35 }
 0xfbb   : > { %v1737_v41 = vadd.f32 %v1735_v38, %v1725_v48  ;;  %v1734_v43 = vmul.f32 %v1732_v40, %v1728_v35 }
 0xfbd   : > { %v1739_v45 = vmul.f32 0.7978846, %v1737_v41  ;;  %v1736_v31 = vmul.f32 0.044715, %v1734_v43 }
 0xfbf   : > { %2365 = vtanh.f32 %v1739_v45  ;;  %v1738_v47 = vadd.f32 %v1736_v31, %v1728_v35 }
 0xfc1   : > { %v1740_v49 = vmul.f32 0.7978846, %v1738_v47 }
 0xfc3   : > { %2367 = vtanh.f32 %v1740_v49 }
 0xfcc   : > { %v2366_v50 = vpop.eup %2365 }
 0xfcd   : > { %v1743_v51 = vadd.f32 1.0, %v2366_v50 }
 0xfcf   : > { %v1745_v54 = vmul.f32 0.5, %v1743_v51 }
 0xfd0   : > { %v2368_v52 = vpop.eup %2367 }
 0xfd1   : > { %v1744_v55 = vadd.f32 1.0, %v2368_v52  ;;  %v1747_v56 = vmul.f32 %v1745_v54, %v1725_v48 }
 0xfd3   : > { %v1746_v53 = vmul.f32 0.5, %v1744_v55 }
 0xfd5   : > { %v1748_v58 = vmul.f32 %v1746_v53, %v1728_v35 }
 0xfd7   : > { %v1749_v59 = vpack.c.bf16 %v1748_v58, %v1747_v56 }
 0xfd9   : > { %2283 = vmatmul.mubr.msk.bf16.vlgmr.msra.gmra.mxu0 %vm1778_vm5, %v1749_v59 }
0x1099   : > { %v1816_v63 = vpop.f32.mrf.mxu0 }
0x109a   : > { %v1817_v1 = vadd.f32 %v1816_v63, %v1753_v61 }
0x109b   : > { %v2284_v2 = vpop.f32.mrf.mxu0 }
0x109c   : > { %v1823_v3 = vadd.f32 %v1817_v1, %v1668_v44  ;;  %v1853_v44 = vsub.s32 6, %v2524_v37 }
0x109d   : > { %v1819_v4 = vpop.f32.mrf.mxu0 }
0x109e   : > { %v1820_v33 = vadd.f32 %v1819_v4, %v1753_v61  ;;  %v1825_v5 = vsel %vm486_vm2, %v1823_v3, 0.0  ;;  %v1854_v20 = vrot.slane %v2528_v39, %v1853_v44 }
0x109f   : > { %1826 = vadd.xlane.f32.xlu1 %v1825_v5  ;;  %v2285_v6 = vpop.f32.mrf.mxu0 }
0x10a0   : > { %v1824_v7 = vadd.f32 %v1820_v33, %v1669_v19  ;;  %v1859_v19 = vsub.s32 7, %v2524_v37 }
0x10a2   : > { %v1828_v34 = vsel %vm486_vm2, %v1824_v7, 0.0  ;;  %v1860_v23 = vrot.slane %v2373_v22, %v1859_v19 }
0x10a3   : > { %1829 = vadd.xlane.f32.xlu0 %v1828_v34 }
0x1128   : > { %v1827_v8 = vpop.xlane.xlu1 %1826 }
0x1129   : > { %v1831_v9 = vmul.f32 0.03125, %v1827_v8 }
0x112b   : > { %v1833_v10 = vsub.f32 %v1823_v3, %v1831_v9 }
0x112c   : > { %v1830_v11 = vpop.xlane.xlu0 %1829 }
0x112d   : > { %v1832_v12 = vmul.f32 0.03125, %v1830_v11  ;;  %v1835_v13 = vmul.f32 %v1833_v10, %v1833_v10 }
0x112f   : > { %v1834_v42 = vsub.f32 %v1824_v7, %v1832_v12  ;;  %v1837_v62 = vsel %vm486_vm2, %v1835_v13, 0.0 }
0x1130   : > { %1838 = vadd.xlane.f32.xlu1 %v1837_v62 }
0x1131   : > { %v1836_v14 = vmul.f32 %v1834_v42, %v1834_v42 }
0x1133   : > { %v1840_v46 = vsel %vm486_vm2, %v1836_v14, 0.0 }
0x1134   : > { %1841 = vadd.xlane.f32.xlu0 %v1840_v46 }
0x11b9   : > { %v1839_v0 = vpop.xlane.xlu1 %1838 }
0x11ba   : > { %v1843_v15 = vmul.f32 0.03125, %v1839_v0 }
0x11bc   : > { %v1845_v16 = vadd.f32 1e-12, %v1843_v15 }
0x11bd   : > { %v1842_v17 = vpop.xlane.xlu0 %1841 }
0x11be   : > { %2369 = vrsqrt.f32 %v1845_v16  ;;  %v1844_v57 = vmul.f32 0.03125, %v1842_v17 }
0x11c0   : > { %v1846_v18 = vadd.f32 1e-12, %v1844_v57 }
0x11c2   : > { %2371 = vrsqrt.f32 %v1846_v18 }
0x11cb   : > { %v2370_v21 = vpop.eup %2369 }
0x11cc   : > { %v1849_v24 = vmul.f32 %v2370_v21, %v1833_v10 }
0x11ce   : > { %v1855_v25 = vmul.f32 %v1854_v20, %v1849_v24 }
0x11cf   : > { %v2372_v26 = vpop.eup %2371 }
0x11d0   : > { %v1861_v27 = vadd.f32 %v1860_v23, %v1855_v25  ;;  %v1850_v48 = vmul.f32 %v2372_v26, %v1834_v42 }
0x11d2   : > { %1863 = vst.msk [vmem:[#allocation2] sm:$0xff] %vm486_vm2, %v1861_v27  ;;  %v1856_v28 = vmul.f32 %v1854_v20, %v1850_v48  ;;  %1868 = sbr.rel (%p2065_p5) target bundleno = 4776 (0x12a8), region = 64 }
0x11d4   : > { %v1862_v29 = vadd.f32 %v1860_v23, %v1856_v28 }
0x11d6   : > { %1864 = vst.msk [vmem:[#allocation2 + $0x8] sm:$0xff] %vm486_vm2, %v1862_v29 }
0x11d7   : > { %v2374_v37 = vld [vmem:[%s2787_s8 + $0x8] sm:$0xff]   ;;  %v2397_v39 = vmov 0.0   ;;  %v2375_v30 = vld [vmem:[%s2787_s8] sm:$0xff]   ;;  %vm2398_vm6 = vmmov 0   ;;  %v1869_v32 = vpack.c.bf16 %v1862_v29, %v1861_v27 }
0x11d8   : > { %2286 = vmatprep.subr.bf16.mxu0 %v2397_v39  ;;  %2290 = vmatprep.mubr.msk.bf16.mxu0 %vm2398_vm6, %v2397_v39 }
0x11d9   : > { %2287 = vmatpush3.bf16.msra.mxu0 %v2374_v37 }
0x11da   : > { %2288 = vmatprep.subr.bf16.mxu0 %v2397_v39 }
0x11dd   : > { %2289 = vmatpush3.bf16.msra.mxu0 %v2375_v30 }
0x11e0   : > { %2291 = vmatmul.mubr.msk.bf16.vlgmr.msra.gmra.mxu0 %vm486_vm2, %v1869_v32 }
0x12a0   : > { %v1923_v35 = vpop.f32.mrf.mxu0 }
0x12a2   : > { %v2292_v36 = vpop.f32.mrf.mxu0 }
0x12a4   : > { %v1926_v38 = vpop.f32.mrf.mxu0 }
0x12a5   : > { %v2082_v40 = vpack.c.bf16 %v1926_v38, %v1923_v35 }
0x12a6   : > { %v2293_v41 = vpop.f32.mrf.mxu0 }
0x12a7   : > { %2083 = vst [vmem:[%s2788_s9] sm:$0xff] %v2082_v40  }
0x12a8 PF: > { %s19_s30 = sadd.s32 1, %s2382_s30  }
0x12a9   : > { %p16_p6 = scmp.ge.s32.totalorder %s19_s30, 4  }
0x12ab   :  { %18 = sbr.rel (!%p16_p6) target bundleno = 1 (0x1), region = 102 }

</bundles_post_ra>
